<compile_context>
chip_gen: v7x
topology: tpu7x:2x2x1
jax: 0.10.0
libtpu: 0.0.40
codegen_flags: <defaults>
</compile_context>

<pallas_src>
import math

import jax
import jax.numpy as jnp
from jax.experimental import pallas as pl
from jax.experimental.pallas import tpu as pltpu

# Model hyperparameters — TransformerModel / nn.TransformerEncoderLayer defaults
INPUT_DIM = 1
D_MODEL = 64
NHEAD = 4
NUM_LAYERS = 2
DIM_FF = 2048          # nn.TransformerEncoderLayer default dim_feedforward
LN_EPS = 1e-5
HEAD_DIM = D_MODEL // NHEAD
MAX_LEN = 5000

# FFN weights are streamed in bf16 (halves HBM weight traffic; MXU-native on all TPU
# generations).  Set to jnp.float32 for strict f32 parity with the PyTorch reference.
FFN_WEIGHT_DTYPE = jnp.bfloat16

# TODO(synk): nn.Dropout (train-mode stochastic masking) has no role in inference;
# all dropouts are identity here (eval semantics).


def _layer_norm(v, w, b):
    mu = jnp.mean(v, axis=-1, keepdims=True)
    var = jnp.mean((v - mu) ** 2, axis=-1, keepdims=True)
    return (v - mu) * jax.lax.rsqrt(var + LN_EPS) * w + b


def transformer_layer_kernel(x_ref, pe_ref, encw_ref, encb_ref,
                             wq_ref, wk_ref, wv_ref, bq_ref, bk_ref, bv_ref,
                             wo_ref, bo_ref, ln1w_ref, ln1b_ref,
                             w1_ref, b1_ref, w2_ref, b2_ref, ln2w_ref, ln2b_ref,
                             decw_ref, decb_ref, out_ref, h_ref):
    """One encoder layer per grid step.

    Activations live in the (B, D) f32 scratch `h_ref`, which persists across the layer
    grid axis.  Attention is over the B axis (batch_first=False quirk of the module).
    """
    l = pl.program_id(0)
    B, D = h_ref.shape
    scale = 1.0 / math.sqrt(HEAD_DIM)

    # ---- first grid step: input embedding Linear(In -> D) + positional encoding ----
    @pl.when(l == 0)
    def _():
        x = x_ref[...]                                        # (B, In) f32
        h0 = jnp.zeros((B, D), jnp.float32) + encb_ref[...]   # (B, D)
        for i in range(x_ref.shape[1]):                       # In == 1: VPU broadcast-MAC
            h0 = h0 + x[:, i:i + 1] * encw_ref[...][i:i + 1, :]
        # pe is indexed by PyTorch dim 0 (= B here) and broadcast over S — faithful to
        # `x + self.pe[:x.size(0), :]`; only the s = S-1 slab is materialized.
        h_ref[...] = h0 + pe_ref[...]

    h = h_ref[...]                                            # (B, D) f32

    # ---- multi-head self-attention: all heads in batched (H, ., .) contractions ----
    hb = jnp.broadcast_to(h, (NHEAD, B, D))                   # (H, B, D)
    q = jnp.einsum('hbd,hdk->hbk', hb, wq_ref[...],
                   preferred_element_type=jnp.float32) + bq_ref[...]
    q = q * scale                                             # fold 1/sqrt(Dh) into q
    k = jnp.einsum('hbd,hdk->hbk', hb, wk_ref[...],
                   preferred_element_type=jnp.float32) + bk_ref[...]
    v = jnp.einsum('hbd,hdk->hbk', hb, wv_ref[...],
                   preferred_element_type=jnp.float32) + bv_ref[...]

    sc = jnp.einsum('hbk,hck->hbc', q, k,
                    preferred_element_type=jnp.float32)       # (H, B, B)
    sc = sc - jnp.max(sc, axis=-1, keepdims=True)
    p = jnp.exp(sc)
    p = p * pl.reciprocal(jnp.sum(p, axis=-1, keepdims=True), approx=True)
    ctx = jnp.einsum('hbc,hck->hbk', p, v,
                     preferred_element_type=jnp.float32)      # (H, B, Dh)
    # per-head output projection summed over heads (== concat heads + Linear(D, D))
    attn = jnp.einsum('hbk,hkd->hbd', ctx, wo_ref[...],
                      preferred_element_type=jnp.float32).sum(axis=0) + bo_ref[...]

    # post-norm residual 1 (f32)
    h = _layer_norm(h + attn, ln1w_ref[...], ln1b_ref[...])

    # ---- feed-forward (ReLU); weights streamed as FFN_WEIGHT_DTYPE (bf16) ----
    ff = jnp.dot(h.astype(w1_ref.dtype), w1_ref[...],
                 preferred_element_type=jnp.float32) + b1_ref[...]
    ff = jnp.maximum(ff, 0.0)
    ff = jnp.dot(ff.astype(w2_ref.dtype), w2_ref[...],
                 preferred_element_type=jnp.float32) + b2_ref[...]

    # post-norm residual 2 (f32)
    h = _layer_norm(h + ff, ln2w_ref[...], ln2b_ref[...])
    h_ref[...] = h

    # ---- last grid step: decoder Linear(D -> 1) on the (only) computed position ----
    @pl.when(l == NUM_LAYERS - 1)
    def _():
        out_ref[...] = jnp.sum(h * decw_ref[...], axis=-1, keepdims=True) + decb_ref[...]


def transformer_forward(x, params):
    """x: (B, S, INPUT_DIM) float32 -> (B, 1) float32.

    The encoder attends over PyTorch dim 0 (=B, batch_first=False quirk) and is
    independent across dim 1 (=S); the decoder reads only position S-1, so only the
    x[:, -1, :] slab is fed to the kernel (bit-identical result, ~S-fold less work).
    """
    B, S, _ = x.shape
    x_last = x[:, S - 1, :]                      # (B, In)
    pe = params['pe'][:B]                        # (B, D): pe[:x.size(0)] as in the module

    inputs = (x_last, pe,
              params['enc_w'], params['enc_b'],
              params['wq'], params['wk'], params['wv'],
              params['bq'], params['bk'], params['bv'],
              params['wo'], params['bo'],
              params['ln1_w'], params['ln1_b'],
              params['w1'], params['b1'], params['w2'], params['b2'],
              params['ln2_w'], params['ln2_b'],
              params['dec_w'], params['dec_b'])

    def const_spec(arr):
        # Full-array block, same block index every layer step (stays resident in VMEM).
        nd = len(arr.shape)
        return pl.BlockSpec(tuple(arr.shape), lambda l, _n=nd: (0,) * _n)

    def layer_spec(arr):
        # Leading dim is the layer axis: one layer's slab per grid step (prefetched by
        # the default double-buffered pipeline while the previous layer computes).
        nd = len(arr.shape)
        return pl.BlockSpec((None,) + tuple(arr.shape[1:]),
                            lambda l, _n=nd: (l,) + (0,) * (_n - 1))

    in_specs = [
        const_spec(x_last), const_spec(pe),
        const_spec(params['enc_w']), const_spec(params['enc_b']),
        layer_spec(params['wq']), layer_spec(params['wk']), layer_spec(params['wv']),
        layer_spec(params['bq']), layer_spec(params['bk']), layer_spec(params['bv']),
        layer_spec(params['wo']), layer_spec(params['bo']),
        layer_spec(params['ln1_w']), layer_spec(params['ln1_b']),
        layer_spec(params['w1']), layer_spec(params['b1']),
        layer_spec(params['w2']), layer_spec(params['b2']),
        layer_spec(params['ln2_w']), layer_spec(params['ln2_b']),
        const_spec(params['dec_w']), const_spec(params['dec_b']),
    ]

    return pl.pallas_call(
        transformer_layer_kernel,
        out_shape=jax.ShapeDtypeStruct((B, 1), jnp.float32),
        grid=(NUM_LAYERS,),
        in_specs=in_specs,
        out_specs=pl.BlockSpec((B, 1), lambda l: (0, 0)),
        scratch_shapes=[pltpu.VMEM((B, D_MODEL), jnp.float32)],
        compiler_params=pltpu.CompilerParams(
            dimension_semantics=("arbitrary",),        # carried activation across layers
            vmem_limit_bytes=16 * 1024 * 1024),        # headroom even on v7x (64 MiB)
    )(*inputs)


transformer_forward_jit = jax.jit(transformer_forward)


def init_params(key):
    ks = jax.random.split(key, 12)

    def rnd(k, shape, scale):
        return (scale * jax.random.normal(k, shape)).astype(jnp.float32)

    L, H, D, Dh, F = NUM_LAYERS, NHEAD, D_MODEL, HEAD_DIM, DIM_FF
    params = {
        # Weights stored pre-transposed as (in_features, out_features); attention
        # weights additionally pre-split per head on the host (one-time layout prep).
        'enc_w': rnd(ks[0], (INPUT_DIM, D), 0.5),
        'enc_b': rnd(ks[1], (1, D), 0.5),
        'wq': rnd(ks[2], (L, H, D, Dh), 0.05),
        'wk': rnd(ks[3], (L, H, D, Dh), 0.05),
        'wv': rnd(ks[4], (L, H, D, Dh), 0.05),
        'bq': jnp.zeros((L, H, 1, Dh), jnp.float32),
        'bk': jnp.zeros((L, H, 1, Dh), jnp.float32),
        'bv': jnp.zeros((L, H, 1, Dh), jnp.float32),
        'wo': rnd(ks[5], (L, H, Dh, D), 0.05),
        'bo': jnp.zeros((L, 1, D), jnp.float32),
        'ln1_w': jnp.ones((L, 1, D), jnp.float32),
        'ln1_b': jnp.zeros((L, 1, D), jnp.float32),
        # FFN weights dominate HBM traffic -> stream as bf16 (flag above)
        'w1': rnd(ks[6], (L, D, F), 0.02).astype(FFN_WEIGHT_DTYPE),
        'b1': rnd(ks[7], (L, 1, F), 0.02),
        'w2': rnd(ks[8], (L, F, D), 0.02).astype(FFN_WEIGHT_DTYPE),
        'b2': rnd(ks[9], (L, 1, D), 0.02),
        'ln2_w': jnp.ones((L, 1, D), jnp.float32),
        'ln2_b': jnp.zeros((L, 1, D), jnp.float32),
        'dec_w': rnd(ks[10], (1, D), 0.1),     # decoder weight as a row vector over D
        'dec_b': jnp.zeros((1, 1), jnp.float32),
    }

    # PositionalEncoding buffer: (max_len, d_model), sin on even cols, cos on odd cols
    position = jnp.arange(MAX_LEN, dtype=jnp.float32)[:, None]
    div_term = jnp.exp(jnp.arange(0, D, 2, dtype=jnp.float32) * (-math.log(10000.0) / D))
    pe = jnp.zeros((MAX_LEN, D), jnp.float32)
    pe = pe.at[:, 0::2].set(jnp.sin(position * div_term))
    pe = pe.at[:, 1::2].set(jnp.cos(position * div_term))
    params['pe'] = pe
    return params


if __name__ == "__main__":
    key = jax.random.PRNGKey(0)
    pkey, xkey = jax.random.split(key)
    params = init_params(pkey)

    B, S = 8, 16                                # small shapes: batch=8, seq=16, feat=1
    x = jax.random.normal(xkey, (B, S, INPUT_DIM), dtype=jnp.float32)

    out = transformer_forward_jit(x, params)
    out = jax.block_until_ready(out)

    assert out.shape == (B, 1), out.shape
    assert bool(jnp.all(jnp.isfinite(out)))
    print("KERNEL_OK")
</pallas_src>

<mosaic_0001>
module attributes {stable_mosaic.version = 11 : i64} {
  func.func @transformer_layer_kernel(%arg0: i32, %arg1: memref<8x1xf32, #tpu.memory_space<vmem>>, %arg2: memref<8x64xf32, #tpu.memory_space<vmem>>, %arg3: memref<1x64xf32, #tpu.memory_space<vmem>>, %arg4: memref<1x64xf32, #tpu.memory_space<vmem>>, %arg5: memref<1x4x64x16xf32, #tpu.memory_space<vmem>>, %arg6: memref<1x4x64x16xf32, #tpu.memory_space<vmem>>, %arg7: memref<1x4x64x16xf32, #tpu.memory_space<vmem>>, %arg8: memref<1x4x1x16xf32, #tpu.memory_space<vmem>>, %arg9: memref<1x4x1x16xf32, #tpu.memory_space<vmem>>, %arg10: memref<1x4x1x16xf32, #tpu.memory_space<vmem>>, %arg11: memref<1x4x16x64xf32, #tpu.memory_space<vmem>>, %arg12: memref<1x1x64xf32, #tpu.memory_space<vmem>>, %arg13: memref<1x1x64xf32, #tpu.memory_space<vmem>>, %arg14: memref<1x1x64xf32, #tpu.memory_space<vmem>>, %arg15: memref<1x64x2048xbf16, #tpu.memory_space<vmem>>, %arg16: memref<1x1x2048xf32, #tpu.memory_space<vmem>>, %arg17: memref<1x2048x64xbf16, #tpu.memory_space<vmem>>, %arg18: memref<1x1x64xf32, #tpu.memory_space<vmem>>, %arg19: memref<1x1x64xf32, #tpu.memory_space<vmem>>, %arg20: memref<1x1x64xf32, #tpu.memory_space<vmem>>, %arg21: memref<1x64xf32, #tpu.memory_space<vmem>>, %arg22: memref<1x1xf32, #tpu.memory_space<vmem>>, %arg23: memref<8x1xf32, #tpu.memory_space<vmem>>, %arg24: memref<8x64xf32, #tpu.memory_space<vmem>>) attributes {dimension_semantics = [#tpu.dimension_semantics<arbitrary>], iteration_bounds = array<i64: 2>, scalar_prefetch = 0 : i64, scratch_operands = 1 : i64, tpu.core_type = #tpu.core_type<tc>, window_params = [{pipeline_mode = #tpu.pipeline_mode<synchronous>, transform_indices = @transform_0, window_bounds = array<i64: 8, 1>}, {pipeline_mode = #tpu.pipeline_mode<synchronous>, transform_indices = @transform_1, window_bounds = array<i64: 8, 64>}, {pipeline_mode = #tpu.pipeline_mode<synchronous>, transform_indices = @transform_2, window_bounds = array<i64: 1, 64>}, {pipeline_mode = #tpu.pipeline_mode<synchronous>, transform_indices = @transform_3, window_bounds = array<i64: 1, 64>}, {transform_indices = @transform_4, window_bounds = array<i64: 1, 4, 64, 16>}, {transform_indices = @transform_5, window_bounds = array<i64: 1, 4, 64, 16>}, {transform_indices = @transform_6, window_bounds = array<i64: 1, 4, 64, 16>}, {transform_indices = @transform_7, window_bounds = array<i64: 1, 4, 1, 16>}, {transform_indices = @transform_8, window_bounds = array<i64: 1, 4, 1, 16>}, {transform_indices = @transform_9, window_bounds = array<i64: 1, 4, 1, 16>}, {transform_indices = @transform_10, window_bounds = array<i64: 1, 4, 16, 64>}, {transform_indices = @transform_11, window_bounds = array<i64: 1, 1, 64>}, {transform_indices = @transform_12, window_bounds = array<i64: 1, 1, 64>}, {transform_indices = @transform_13, window_bounds = array<i64: 1, 1, 64>}, {transform_indices = @transform_14, window_bounds = array<i64: 1, 64, 2048>}, {transform_indices = @transform_15, window_bounds = array<i64: 1, 1, 2048>}, {transform_indices = @transform_16, window_bounds = array<i64: 1, 2048, 64>}, {transform_indices = @transform_17, window_bounds = array<i64: 1, 1, 64>}, {transform_indices = @transform_18, window_bounds = array<i64: 1, 1, 64>}, {transform_indices = @transform_19, window_bounds = array<i64: 1, 1, 64>}, {pipeline_mode = #tpu.pipeline_mode<synchronous>, transform_indices = @transform_20, window_bounds = array<i64: 1, 64>}, {pipeline_mode = #tpu.pipeline_mode<synchronous>, transform_indices = @transform_21, window_bounds = array<i64: 1, 1>}, {pipeline_mode = #tpu.pipeline_mode<synchronous>, transform_indices = @transform_22, window_bounds = array<i64: 8, 1>}]} {
    %c0_i32 = arith.constant 0 : i32
    %0 = arith.cmpi eq, %arg0, %c0_i32 : i32
    %1 = arith.extui %0 : i1 to i32
    %c0_i32_0 = arith.constant 0 : i32
    %2 = arith.cmpi ne, %1, %c0_i32_0 : i32
    scf.if %2 {
      %c0_82 = arith.constant 0 : index
      %c0_83 = arith.constant 0 : index
      %125 = vector.load %arg1[%c0_82, %c0_83] : memref<8x1xf32, #tpu.memory_space<vmem>>, vector<8x1xf32>
      %cst_84 = arith.constant 0.000000e+00 : f32
      %126 = vector.broadcast %cst_84 : f32 to vector<8x64xf32>
      %c0_85 = arith.constant 0 : index
      %c0_86 = arith.constant 0 : index
      %127 = vector.load %arg4[%c0_85, %c0_86] : memref<1x64xf32, #tpu.memory_space<vmem>>, vector<1x64xf32>
      %128 = vector.broadcast %127 : vector<1x64xf32> to vector<8x64xf32>
      %129 = arith.addf %126, %128 : vector<8x64xf32>
      %c0_87 = arith.constant 0 : index
      %c0_88 = arith.constant 0 : index
      %130 = vector.load %arg3[%c0_87, %c0_88] : memref<1x64xf32, #tpu.memory_space<vmem>>, vector<1x64xf32>
      %131 = vector.broadcast %125 : vector<8x1xf32> to vector<8x64xf32>
      %132 = vector.broadcast %130 : vector<1x64xf32> to vector<8x64xf32>
      %133 = arith.mulf %131, %132 : vector<8x64xf32>
      %134 = arith.addf %129, %133 : vector<8x64xf32>
      %c0_89 = arith.constant 0 : index
      %c0_90 = arith.constant 0 : index
      %135 = vector.load %arg2[%c0_89, %c0_90] : memref<8x64xf32, #tpu.memory_space<vmem>>, vector<8x64xf32>
      %136 = arith.addf %134, %135 : vector<8x64xf32>
      %c0_91 = arith.constant 0 : index
      %c0_92 = arith.constant 0 : index
      %137 = vector.load %arg24[%c0_91, %c0_92] : memref<8x64xf32, #tpu.memory_space<vmem>>, vector<8x64xf32>
      tpu.vector_store %arg24[%c0_91, %c0_92], %136 {strides = array<i32>} : memref<8x64xf32, #tpu.memory_space<vmem>>, vector<8x64xf32>,
    } else {
    }
    %c0 = arith.constant 0 : index
    %c0_1 = arith.constant 0 : index
    %3 = vector.load %arg24[%c0, %c0_1] : memref<8x64xf32, #tpu.memory_space<vmem>>, vector<8x64xf32>
    %4 = vector.shape_cast %3 : vector<8x64xf32> to vector<1x8x64xf32>
    %5 = vector.broadcast %4 : vector<1x8x64xf32> to vector<4x8x64xf32>
    %c0_2 = arith.constant 0 : index
    %c0_3 = arith.constant 0 : index
    %c0_4 = arith.constant 0 : index
    %c0_5 = arith.constant 0 : index
    %6 = vector.load %arg5[%c0_2, %c0_3, %c0_4, %c0_5] : memref<1x4x64x16xf32, #tpu.memory_space<vmem>>, vector<1x4x64x16xf32>
    %7 = vector.shape_cast %6 : vector<1x4x64x16xf32> to vector<4x64x16xf32>
    "tpu.trace_start"() <{level = 10 : i32, message = "hbd,hdk->hbk"}> : () -> ()
    %cst = arith.constant dense<0.000000e+00> : vector<4x8x16xf32>
    %8 = tpu.matmul %5, %7, %cst {dimension_numbers = #tpu.dot_dimension_numbers<[2], [1], [1], [2], [0, 0, 0, 1, 1, 2], [0], [0]>} : vector<4x8x64xf32>, vector<4x64x16xf32>, vector<4x8x16xf32> -> vector<4x8x16xf32>
    "tpu.trace_stop"() : () -> ()
    %c0_6 = arith.constant 0 : index
    %c0_7 = arith.constant 0 : index
    %c0_8 = arith.constant 0 : index
    %c0_9 = arith.constant 0 : index
    %9 = vector.load %arg8[%c0_6, %c0_7, %c0_8, %c0_9] : memref<1x4x1x16xf32, #tpu.memory_space<vmem>>, vector<1x4x1x16xf32>
    %10 = vector.shape_cast %9 : vector<1x4x1x16xf32> to vector<4x1x16xf32>
    %11 = vector.broadcast %10 : vector<4x1x16xf32> to vector<4x8x16xf32>
    %12 = arith.addf %8, %11 : vector<4x8x16xf32>
    %cst_10 = arith.constant 2.500000e-01 : f32
    %13 = vector.broadcast %cst_10 : f32 to vector<4x8x16xf32>
    %14 = arith.mulf %12, %13 : vector<4x8x16xf32>
    %c0_11 = arith.constant 0 : index
    %c0_12 = arith.constant 0 : index
    %c0_13 = arith.constant 0 : index
    %c0_14 = arith.constant 0 : index
    %15 = vector.load %arg6[%c0_11, %c0_12, %c0_13, %c0_14] : memref<1x4x64x16xf32, #tpu.memory_space<vmem>>, vector<1x4x64x16xf32>
    %16 = vector.shape_cast %15 : vector<1x4x64x16xf32> to vector<4x64x16xf32>
    "tpu.trace_start"() <{level = 10 : i32, message = "hbd,hdk->hbk"}> : () -> ()
    %cst_15 = arith.constant dense<0.000000e+00> : vector<4x8x16xf32>
    %17 = tpu.matmul %5, %16, %cst_15 {dimension_numbers = #tpu.dot_dimension_numbers<[2], [1], [1], [2], [0, 0, 0, 1, 1, 2], [0], [0]>} : vector<4x8x64xf32>, vector<4x64x16xf32>, vector<4x8x16xf32> -> vector<4x8x16xf32>
    "tpu.trace_stop"() : () -> ()
    %c0_16 = arith.constant 0 : index
    %c0_17 = arith.constant 0 : index
    %c0_18 = arith.constant 0 : index
    %c0_19 = arith.constant 0 : index
    %18 = vector.load %arg9[%c0_16, %c0_17, %c0_18, %c0_19] : memref<1x4x1x16xf32, #tpu.memory_space<vmem>>, vector<1x4x1x16xf32>
    %19 = vector.shape_cast %18 : vector<1x4x1x16xf32> to vector<4x1x16xf32>
    %20 = vector.broadcast %19 : vector<4x1x16xf32> to vector<4x8x16xf32>
    %21 = arith.addf %17, %20 : vector<4x8x16xf32>
    %c0_20 = arith.constant 0 : index
    %c0_21 = arith.constant 0 : index
    %c0_22 = arith.constant 0 : index
    %c0_23 = arith.constant 0 : index
    %22 = vector.load %arg7[%c0_20, %c0_21, %c0_22, %c0_23] : memref<1x4x64x16xf32, #tpu.memory_space<vmem>>, vector<1x4x64x16xf32>
    %23 = vector.shape_cast %22 : vector<1x4x64x16xf32> to vector<4x64x16xf32>
    "tpu.trace_start"() <{level = 10 : i32, message = "hbd,hdk->hbk"}> : () -> ()
    %cst_24 = arith.constant dense<0.000000e+00> : vector<4x8x16xf32>
    %24 = tpu.matmul %5, %23, %cst_24 {dimension_numbers = #tpu.dot_dimension_numbers<[2], [1], [1], [2], [0, 0, 0, 1, 1, 2], [0], [0]>} : vector<4x8x64xf32>, vector<4x64x16xf32>, vector<4x8x16xf32> -> vector<4x8x16xf32>
    "tpu.trace_stop"() : () -> ()
    %c0_25 = arith.constant 0 : index
    %c0_26 = arith.constant 0 : index
    %c0_27 = arith.constant 0 : index
    %c0_28 = arith.constant 0 : index
    %25 = vector.load %arg10[%c0_25, %c0_26, %c0_27, %c0_28] : memref<1x4x1x16xf32, #tpu.memory_space<vmem>>, vector<1x4x1x16xf32>
    %26 = vector.shape_cast %25 : vector<1x4x1x16xf32> to vector<4x1x16xf32>
    %27 = vector.broadcast %26 : vector<4x1x16xf32> to vector<4x8x16xf32>
    %28 = arith.addf %24, %27 : vector<4x8x16xf32>
    "tpu.trace_start"() <{level = 10 : i32, message = "hbk,hck->hbc"}> : () -> ()
    %cst_29 = arith.constant dense<0.000000e+00> : vector<4x8x8xf32>
    %29 = tpu.matmul %14, %21, %cst_29 {dimension_numbers = #tpu.dot_dimension_numbers<[2], [2], [1], [1], [0, 0, 0, 1, 1, 1], [0], [0]>} : vector<4x8x16xf32>, vector<4x8x16xf32>, vector<4x8x8xf32> -> vector<4x8x8xf32>
    "tpu.trace_stop"() : () -> ()
    %cst_30 = arith.constant dense<0xFF800000> : vector<4x8xf32>
    %30 = vector.multi_reduction <maximumf>, %29, %cst_30 [2] : vector<4x8x8xf32> to vector<4x8xf32>
    %31 = vector.shape_cast %30 : vector<4x8xf32> to vector<4x8x1xf32>
    %32 = vector.broadcast %31 : vector<4x8x1xf32> to vector<4x8x8xf32>
    %33 = arith.subf %29, %32 : vector<4x8x8xf32>
    %34 = math.exp %33 : vector<4x8x8xf32>
    %cst_31 = arith.constant dense<0.000000e+00> : vector<4x8xf32>
    %35 = vector.multi_reduction <add>, %34, %cst_31 [2] : vector<4x8x8xf32> to vector<4x8xf32>
    %36 = vector.shape_cast %35 : vector<4x8xf32> to vector<4x8x1xf32>
    %37 = tpu.reciprocal %36 {approx = true} : vector<4x8x1xf32> -> vector<4x8x1xf32>
    %38 = vector.broadcast %37 : vector<4x8x1xf32> to vector<4x8x8xf32>
    %39 = arith.mulf %34, %38 : vector<4x8x8xf32>
    "tpu.trace_start"() <{level = 10 : i32, message = "hbc,hck->hbk"}> : () -> ()
    %cst_32 = arith.constant dense<0.000000e+00> : vector<4x8x16xf32>
    %40 = tpu.matmul %39, %28, %cst_32 {dimension_numbers = #tpu.dot_dimension_numbers<[2], [1], [1], [2], [0, 0, 0, 1, 1, 2], [0], [0]>} : vector<4x8x8xf32>, vector<4x8x16xf32>, vector<4x8x16xf32> -> vector<4x8x16xf32>
    "tpu.trace_stop"() : () -> ()
    %c0_33 = arith.constant 0 : index
    %c0_34 = arith.constant 0 : index
    %c0_35 = arith.constant 0 : index
    %c0_36 = arith.constant 0 : index
    %41 = vector.load %arg11[%c0_33, %c0_34, %c0_35, %c0_36] : memref<1x4x16x64xf32, #tpu.memory_space<vmem>>, vector<1x4x16x64xf32>
    %42 = vector.shape_cast %41 : vector<1x4x16x64xf32> to vector<4x16x64xf32>
    "tpu.trace_start"() <{level = 10 : i32, message = "hbk,hkd->hbd"}> : () -> ()
    %cst_37 = arith.constant dense<0.000000e+00> : vector<4x8x64xf32>
    %43 = tpu.matmul %40, %42, %cst_37 {dimension_numbers = #tpu.dot_dimension_numbers<[2], [1], [1], [2], [0, 0, 0, 1, 1, 2], [0], [0]>} : vector<4x8x16xf32>, vector<4x16x64xf32>, vector<4x8x64xf32> -> vector<4x8x64xf32>
    "tpu.trace_stop"() : () -> ()
    %cst_38 = arith.constant dense<0.000000e+00> : vector<8x64xf32>
    %44 = vector.multi_reduction <add>, %43, %cst_38 [0] : vector<4x8x64xf32> to vector<8x64xf32>
    %c0_39 = arith.constant 0 : index
    %c0_40 = arith.constant 0 : index
    %c0_41 = arith.constant 0 : index
    %45 = vector.load %arg12[%c0_39, %c0_40, %c0_41] : memref<1x1x64xf32, #tpu.memory_space<vmem>>, vector<1x1x64xf32>
    %46 = vector.shape_cast %45 : vector<1x1x64xf32> to vector<1x64xf32>
    %47 = vector.broadcast %46 : vector<1x64xf32> to vector<8x64xf32>
    %48 = arith.addf %44, %47 : vector<8x64xf32>
    %49 = arith.addf %3, %48 : vector<8x64xf32>
    %c0_42 = arith.constant 0 : index
    %c0_43 = arith.constant 0 : index
    %c0_44 = arith.constant 0 : index
    %50 = vector.load %arg13[%c0_42, %c0_43, %c0_44] : memref<1x1x64xf32, #tpu.memory_space<vmem>>, vector<1x1x64xf32>
    %51 = vector.shape_cast %50 : vector<1x1x64xf32> to vector<1x64xf32>
    %c0_45 = arith.constant 0 : index
    %c0_46 = arith.constant 0 : index
    %c0_47 = arith.constant 0 : index
    %52 = vector.load %arg14[%c0_45, %c0_46, %c0_47] : memref<1x1x64xf32, #tpu.memory_space<vmem>>, vector<1x1x64xf32>
    %53 = vector.shape_cast %52 : vector<1x1x64xf32> to vector<1x64xf32>
    %cst_48 = arith.constant dense<0.000000e+00> : vector<8xf32>
    %54 = vector.multi_reduction <add>, %49, %cst_48 [1] : vector<8x64xf32> to vector<8xf32>
    %55 = vector.shape_cast %54 : vector<8xf32> to vector<8x1xf32>
    %cst_49 = arith.constant 6.400000e+01 : f32
    %56 = vector.broadcast %cst_49 : f32 to vector<8x1xf32>
    %57 = arith.divf %55, %56 : vector<8x1xf32>
    %58 = vector.broadcast %57 : vector<8x1xf32> to vector<8x64xf32>
    %59 = arith.subf %49, %58 : vector<8x64xf32>
    %60 = arith.mulf %59, %59 : vector<8x64xf32>
    %cst_50 = arith.constant dense<0.000000e+00> : vector<8xf32>
    %61 = vector.multi_reduction <add>, %60, %cst_50 [1] : vector<8x64xf32> to vector<8xf32>
    %62 = vector.shape_cast %61 : vector<8xf32> to vector<8x1xf32>
    %cst_51 = arith.constant 6.400000e+01 : f32
    %63 = vector.broadcast %cst_51 : f32 to vector<8x1xf32>
    %64 = arith.divf %62, %63 : vector<8x1xf32>
    %65 = vector.broadcast %57 : vector<8x1xf32> to vector<8x64xf32>
    %66 = arith.subf %49, %65 : vector<8x64xf32>
    %cst_52 = arith.constant 9.99999974E-6 : f32
    %67 = vector.broadcast %cst_52 : f32 to vector<8x1xf32>
    %68 = arith.addf %64, %67 : vector<8x1xf32>
    %69 = math.rsqrt %68 : vector<8x1xf32>
    %70 = vector.broadcast %69 : vector<8x1xf32> to vector<8x64xf32>
    %71 = arith.mulf %66, %70 : vector<8x64xf32>
    %72 = vector.broadcast %51 : vector<1x64xf32> to vector<8x64xf32>
    %73 = arith.mulf %71, %72 : vector<8x64xf32>
    %74 = vector.broadcast %53 : vector<1x64xf32> to vector<8x64xf32>
    %75 = arith.addf %73, %74 : vector<8x64xf32>
    %76 = arith.truncf %75 : vector<8x64xf32> to vector<8x64xbf16>
    %c0_53 = arith.constant 0 : index
    %c0_54 = arith.constant 0 : index
    %c0_55 = arith.constant 0 : index
    %77 = vector.load %arg15[%c0_53, %c0_54, %c0_55] : memref<1x64x2048xbf16, #tpu.memory_space<vmem>>, vector<1x64x2048xbf16>
    %78 = vector.shape_cast %77 : vector<1x64x2048xbf16> to vector<64x2048xbf16>
    %cst_56 = arith.constant dense<0.000000e+00> : vector<8x2048xf32>
    %79 = tpu.matmul %76, %78, %cst_56 {dimension_numbers = #tpu.dot_dimension_numbers<[1], [0], [0], [1], [0, 0, 1, 1], [], []>} : vector<8x64xbf16>, vector<64x2048xbf16>, vector<8x2048xf32> -> vector<8x2048xf32>
    %c0_57 = arith.constant 0 : index
    %c0_58 = arith.constant 0 : index
    %c0_59 = arith.constant 0 : index
    %80 = vector.load %arg16[%c0_57, %c0_58, %c0_59] : memref<1x1x2048xf32, #tpu.memory_space<vmem>>, vector<1x1x2048xf32>
    %81 = vector.shape_cast %80 : vector<1x1x2048xf32> to vector<1x2048xf32>
    %82 = vector.broadcast %81 : vector<1x2048xf32> to vector<8x2048xf32>
    %83 = arith.addf %79, %82 : vector<8x2048xf32>
    %cst_60 = arith.constant 0.000000e+00 : f32
    %84 = vector.broadcast %cst_60 : f32 to vector<8x2048xf32>
    %85 = arith.maximumf %83, %84 : vector<8x2048xf32>
    %86 = arith.truncf %85 : vector<8x2048xf32> to vector<8x2048xbf16>
    %c0_61 = arith.constant 0 : index
    %c0_62 = arith.constant 0 : index
    %c0_63 = arith.constant 0 : index
    %87 = vector.load %arg17[%c0_61, %c0_62, %c0_63] : memref<1x2048x64xbf16, #tpu.memory_space<vmem>>, vector<1x2048x64xbf16>
    %88 = vector.shape_cast %87 : vector<1x2048x64xbf16> to vector<2048x64xbf16>
    %cst_64 = arith.constant dense<0.000000e+00> : vector<8x64xf32>
    %89 = tpu.matmul %86, %88, %cst_64 {dimension_numbers = #tpu.dot_dimension_numbers<[1], [0], [0], [1], [0, 0, 1, 1], [], []>} : vector<8x2048xbf16>, vector<2048x64xbf16>, vector<8x64xf32> -> vector<8x64xf32>
    %c0_65 = arith.constant 0 : index
    %c0_66 = arith.constant 0 : index
    %c0_67 = arith.constant 0 : index
    %90 = vector.load %arg18[%c0_65, %c0_66, %c0_67] : memref<1x1x64xf32, #tpu.memory_space<vmem>>, vector<1x1x64xf32>
    %91 = vector.shape_cast %90 : vector<1x1x64xf32> to vector<1x64xf32>
    %92 = vector.broadcast %91 : vector<1x64xf32> to vector<8x64xf32>
    %93 = arith.addf %89, %92 : vector<8x64xf32>
    %94 = arith.addf %75, %93 : vector<8x64xf32>
    %c0_68 = arith.constant 0 : index
    %c0_69 = arith.constant 0 : index
    %c0_70 = arith.constant 0 : index
    %95 = vector.load %arg19[%c0_68, %c0_69, %c0_70] : memref<1x1x64xf32, #tpu.memory_space<vmem>>, vector<1x1x64xf32>
    %96 = vector.shape_cast %95 : vector<1x1x64xf32> to vector<1x64xf32>
    %c0_71 = arith.constant 0 : index
    %c0_72 = arith.constant 0 : index
    %c0_73 = arith.constant 0 : index
    %97 = vector.load %arg20[%c0_71, %c0_72, %c0_73] : memref<1x1x64xf32, #tpu.memory_space<vmem>>, vector<1x1x64xf32>
    %98 = vector.shape_cast %97 : vector<1x1x64xf32> to vector<1x64xf32>
    %cst_74 = arith.constant dense<0.000000e+00> : vector<8xf32>
    %99 = vector.multi_reduction <add>, %94, %cst_74 [1] : vector<8x64xf32> to vector<8xf32>
    %100 = vector.shape_cast %99 : vector<8xf32> to vector<8x1xf32>
    %cst_75 = arith.constant 6.400000e+01 : f32
    %101 = vector.broadcast %cst_75 : f32 to vector<8x1xf32>
    %102 = arith.divf %100, %101 : vector<8x1xf32>
    %103 = vector.broadcast %102 : vector<8x1xf32> to vector<8x64xf32>
    %104 = arith.subf %94, %103 : vector<8x64xf32>
    %105 = arith.mulf %104, %104 : vector<8x64xf32>
    %cst_76 = arith.constant dense<0.000000e+00> : vector<8xf32>
    %106 = vector.multi_reduction <add>, %105, %cst_76 [1] : vector<8x64xf32> to vector<8xf32>
    %107 = vector.shape_cast %106 : vector<8xf32> to vector<8x1xf32>
    %cst_77 = arith.constant 6.400000e+01 : f32
    %108 = vector.broadcast %cst_77 : f32 to vector<8x1xf32>
    %109 = arith.divf %107, %108 : vector<8x1xf32>
    %110 = vector.broadcast %102 : vector<8x1xf32> to vector<8x64xf32>
    %111 = arith.subf %94, %110 : vector<8x64xf32>
    %cst_78 = arith.constant 9.99999974E-6 : f32
    %112 = vector.broadcast %cst_78 : f32 to vector<8x1xf32>
    %113 = arith.addf %109, %112 : vector<8x1xf32>
    %114 = math.rsqrt %113 : vector<8x1xf32>
    %115 = vector.broadcast %114 : vector<8x1xf32> to vector<8x64xf32>
    %116 = arith.mulf %111, %115 : vector<8x64xf32>
    %117 = vector.broadcast %96 : vector<1x64xf32> to vector<8x64xf32>
    %118 = arith.mulf %116, %117 : vector<8x64xf32>
    %119 = vector.broadcast %98 : vector<1x64xf32> to vector<8x64xf32>
    %120 = arith.addf %118, %119 : vector<8x64xf32>
    %c0_79 = arith.constant 0 : index
    %c0_80 = arith.constant 0 : index
    %121 = vector.load %arg24[%c0_79, %c0_80] : memref<8x64xf32, #tpu.memory_space<vmem>>, vector<8x64xf32>
    tpu.vector_store %arg24[%c0_79, %c0_80], %120 {strides = array<i32>} : memref<8x64xf32, #tpu.memory_space<vmem>>, vector<8x64xf32>,
    %c1_i32 = arith.constant 1 : i32
    %122 = arith.cmpi eq, %arg0, %c1_i32 : i32
    %123 = arith.extui %122 : i1 to i32
    %c0_i32_81 = arith.constant 0 : i32
    %124 = arith.cmpi ne, %123, %c0_i32_81 : i32
    scf.if %124 {
      %c0_82 = arith.constant 0 : index
      %c0_83 = arith.constant 0 : index
      %125 = vector.load %arg21[%c0_82, %c0_83] : memref<1x64xf32, #tpu.memory_space<vmem>>, vector<1x64xf32>
      %126 = vector.broadcast %125 : vector<1x64xf32> to vector<8x64xf32>
      %127 = arith.mulf %120, %126 : vector<8x64xf32>
      %cst_84 = arith.constant dense<0.000000e+00> : vector<8xf32>
      %128 = vector.multi_reduction <add>, %127, %cst_84 [1] : vector<8x64xf32> to vector<8xf32>
      %129 = vector.shape_cast %128 : vector<8xf32> to vector<8x1xf32>
      %c0_85 = arith.constant 0 : index
      %c0_86 = arith.constant 0 : index
      %130 = vector.load %arg22[%c0_85, %c0_86] : memref<1x1xf32, #tpu.memory_space<vmem>>, vector<1x1xf32>
      %131 = vector.broadcast %130 : vector<1x1xf32> to vector<8x1xf32>
      %132 = arith.addf %129, %131 : vector<8x1xf32>
      %c0_87 = arith.constant 0 : index
      %c0_88 = arith.constant 0 : index
      %133 = vector.load %arg23[%c0_87, %c0_88] : memref<8x1xf32, #tpu.memory_space<vmem>>, vector<8x1xf32>
      tpu.vector_store %arg23[%c0_87, %c0_88], %132 {strides = array<i32>} : memref<8x1xf32, #tpu.memory_space<vmem>>, vector<8x1xf32>,
    } else {
    }
    return
  }
  func.func @transform_0(%arg0: i32) -> (i32, i32) {
    %c0_i32 = arith.constant 0 : i32
    %c0_i32_0 = arith.constant 0 : i32
    %c0_i32_1 = arith.constant 0 : i32
    return %c0_i32, %c0_i32_0 : i32, i32
  }
  func.func @transform_1(%arg0: i32) -> (i32, i32) {
    %c0_i32 = arith.constant 0 : i32
    %c0_i32_0 = arith.constant 0 : i32
    %c0_i32_1 = arith.constant 0 : i32
    return %c0_i32, %c0_i32_0 : i32, i32
  }
  func.func @transform_2(%arg0: i32) -> (i32, i32) {
    %c0_i32 = arith.constant 0 : i32
    %c0_i32_0 = arith.constant 0 : i32
    %c0_i32_1 = arith.constant 0 : i32
    return %c0_i32, %c0_i32_0 : i32, i32
  }
  func.func @transform_3(%arg0: i32) -> (i32, i32) {
    %c0_i32 = arith.constant 0 : i32
    %c0_i32_0 = arith.constant 0 : i32
    %c0_i32_1 = arith.constant 0 : i32
    return %c0_i32, %c0_i32_0 : i32, i32
  }
  func.func @transform_4(%arg0: i32) -> (i32, i32, i32, i32) {
    %c0_i32 = arith.constant 0 : i32
    %c0_i32_0 = arith.constant 0 : i32
    %c0_i32_1 = arith.constant 0 : i32
    %c0_i32_2 = arith.constant 0 : i32
    return %arg0, %c0_i32, %c0_i32_0, %c0_i32_1 : i32, i32, i32, i32
  }
  func.func @transform_5(%arg0: i32) -> (i32, i32, i32, i32) {
    %c0_i32 = arith.constant 0 : i32
    %c0_i32_0 = arith.constant 0 : i32
    %c0_i32_1 = arith.constant 0 : i32
    %c0_i32_2 = arith.constant 0 : i32
    return %arg0, %c0_i32, %c0_i32_0, %c0_i32_1 : i32, i32, i32, i32
  }
  func.func @transform_6(%arg0: i32) -> (i32, i32, i32, i32) {
    %c0_i32 = arith.constant 0 : i32
    %c0_i32_0 = arith.constant 0 : i32
    %c0_i32_1 = arith.constant 0 : i32
    %c0_i32_2 = arith.constant 0 : i32
    return %arg0, %c0_i32, %c0_i32_0, %c0_i32_1 : i32, i32, i32, i32
  }
  func.func @transform_7(%arg0: i32) -> (i32, i32, i32, i32) {
    %c0_i32 = arith.constant 0 : i32
    %c0_i32_0 = arith.constant 0 : i32
    %c0_i32_1 = arith.constant 0 : i32
    %c0_i32_2 = arith.constant 0 : i32
    return %arg0, %c0_i32, %c0_i32_0, %c0_i32_1 : i32, i32, i32, i32
  }
  func.func @transform_8(%arg0: i32) -> (i32, i32, i32, i32) {
    %c0_i32 = arith.constant 0 : i32
    %c0_i32_0 = arith.constant 0 : i32
    %c0_i32_1 = arith.constant 0 : i32
    %c0_i32_2 = arith.constant 0 : i32
    return %arg0, %c0_i32, %c0_i32_0, %c0_i32_1 : i32, i32, i32, i32
  }
  func.func @transform_9(%arg0: i32) -> (i32, i32, i32, i32) {
    %c0_i32 = arith.constant 0 : i32
    %c0_i32_0 = arith.constant 0 : i32
    %c0_i32_1 = arith.constant 0 : i32
    %c0_i32_2 = arith.constant 0 : i32
    return %arg0, %c0_i32, %c0_i32_0, %c0_i32_1 : i32, i32, i32, i32
  }
  func.func @transform_10(%arg0: i32) -> (i32, i32, i32, i32) {
    %c0_i32 = arith.constant 0 : i32
    %c0_i32_0 = arith.constant 0 : i32
    %c0_i32_1 = arith.constant 0 : i32
    %c0_i32_2 = arith.constant 0 : i32
    return %arg0, %c0_i32, %c0_i32_0, %c0_i32_1 : i32, i32, i32, i32
  }
  func.func @transform_11(%arg0: i32) -> (i32, i32, i32) {
    %c0_i32 = arith.constant 0 : i32
    %c0_i32_0 = arith.constant 0 : i32
    %c0_i32_1 = arith.constant 0 : i32
    return %arg0, %c0_i32, %c0_i32_0 : i32, i32, i32
  }
  func.func @transform_12(%arg0: i32) -> (i32, i32, i32) {
    %c0_i32 = arith.constant 0 : i32
    %c0_i32_0 = arith.constant 0 : i32
    %c0_i32_1 = arith.constant 0 : i32
    return %arg0, %c0_i32, %c0_i32_0 : i32, i32, i32
  }
  func.func @transform_13(%arg0: i32) -> (i32, i32, i32) {
    %c0_i32 = arith.constant 0 : i32
    %c0_i32_0 = arith.constant 0 : i32
    %c0_i32_1 = arith.constant 0 : i32
    return %arg0, %c0_i32, %c0_i32_0 : i32, i32, i32
  }
  func.func @transform_14(%arg0: i32) -> (i32, i32, i32) {
    %c0_i32 = arith.constant 0 : i32
    %c0_i32_0 = arith.constant 0 : i32
    %c0_i32_1 = arith.constant 0 : i32
    return %arg0, %c0_i32, %c0_i32_0 : i32, i32, i32
  }
  func.func @transform_15(%arg0: i32) -> (i32, i32, i32) {
    %c0_i32 = arith.constant 0 : i32
    %c0_i32_0 = arith.constant 0 : i32
    %c0_i32_1 = arith.constant 0 : i32
    return %arg0, %c0_i32, %c0_i32_0 : i32, i32, i32
  }
  func.func @transform_16(%arg0: i32) -> (i32, i32, i32) {
    %c0_i32 = arith.constant 0 : i32
    %c0_i32_0 = arith.constant 0 : i32
    %c0_i32_1 = arith.constant 0 : i32
    return %arg0, %c0_i32, %c0_i32_0 : i32, i32, i32
  }
  func.func @transform_17(%arg0: i32) -> (i32, i32, i32) {
    %c0_i32 = arith.constant 0 : i32
    %c0_i32_0 = arith.constant 0 : i32
    %c0_i32_1 = arith.constant 0 : i32
    return %arg0, %c0_i32, %c0_i32_0 : i32, i32, i32
  }
  func.func @transform_18(%arg0: i32) -> (i32, i32, i32) {
    %c0_i32 = arith.constant 0 : i32
    %c0_i32_0 = arith.constant 0 : i32
    %c0_i32_1 = arith.constant 0 : i32
    return %arg0, %c0_i32, %c0_i32_0 : i32, i32, i32
  }
  func.func @transform_19(%arg0: i32) -> (i32, i32, i32) {
    %c0_i32 = arith.constant 0 : i32
    %c0_i32_0 = arith.constant 0 : i32
    %c0_i32_1 = arith.constant 0 : i32
    return %arg0, %c0_i32, %c0_i32_0 : i32, i32, i32
  }
  func.func @transform_20(%arg0: i32) -> (i32, i32) {
    %c0_i32 = arith.constant 0 : i32
    %c0_i32_0 = arith.constant 0 : i32
    %c0_i32_1 = arith.constant 0 : i32
    return %c0_i32, %c0_i32_0 : i32, i32
  }
  func.func @transform_21(%arg0: i32) -> (i32, i32) {
    %c0_i32 = arith.constant 0 : i32
    %c0_i32_0 = arith.constant 0 : i32
    %c0_i32_1 = arith.constant 0 : i32
    return %c0_i32, %c0_i32_0 : i32, i32
  }
  func.func @transform_22(%arg0: i32) -> (i32, i32) {
    %c0_i32 = arith.constant 0 : i32
    %c0_i32_0 = arith.constant 0 : i32
    %c0_i32_1 = arith.constant 0 : i32
    return %c0_i32, %c0_i32_0 : i32, i32
  }
}

</mosaic_0001>

<bundles_post_ra>
// kernel: transformer_forward.1
= control target key start
LH: loop header
LB: loop body
LE: loop exit
PB: predicated region body
PF: predicated region fallthrough
CT: control target
= control target key end

     0   :  { %s6739_s29 = smov 0   ;;  %s7480_s0 = inlined_call_operand.vmem [shape: f32[8,1], index: 0, kind: input, shape index: {}]   ;;  %s7481_s1 = inlined_call_operand.vmem [shape: f32[8,64], index: 1, kind: input, shape index: {}]   ;;  %s7482_s2 = inlined_call_operand.vmem [shape: f32[1,64], index: 2, kind: input, shape index: {}]   ;;  %s7483_s3 = inlined_call_operand.vmem [shape: f32[1,64], index: 3, kind: input, shape index: {}]   ;;  %s7484_s4 = inlined_call_operand.vmem [shape: f32[2,4,64,16], index: 4, kind: input, shape index: {}]   ;;  %s7485_s5 = inlined_call_operand.vmem [shape: f32[2,4,64,16], index: 5, kind: input, shape index: {}]   ;;  %s7486_s6 = inlined_call_operand.vmem [shape: f32[2,4,64,16], index: 6, kind: input, shape index: {}]   ;;  %s7487_s7 = inlined_call_operand.vmem [shape: f32[2,4,1,16], index: 7, kind: input, shape index: {}]   ;;  %s7488_s8 = inlined_call_operand.vmem [shape: f32[2,4,1,16], index: 8, kind: input, shape index: {}]   ;;  %s7489_s9 = inlined_call_operand.vmem [shape: f32[2,4,1,16], index: 9, kind: input, shape index: {}]   ;;  %s7490_s10 = inlined_call_operand.vmem [shape: f32[2,4,16,64], index: 10, kind: input, shape index: {}]   ;;  %s7491_s11 = inlined_call_operand.vmem [shape: f32[2,1,64], index: 11, kind: input, shape index: {}]   ;;  %s7492_s12 = inlined_call_operand.vmem [shape: f32[2,1,64], index: 12, kind: input, shape index: {}]   ;;  %s7493_s13 = inlined_call_operand.vmem [shape: f32[2,1,64], index: 13, kind: input, shape index: {}]   ;;  %s7494_s14 = inlined_call_operand.vmem [shape: bf16[2,64,2048], index: 14, kind: input, shape index: {}]   ;;  %s7495_s15 = inlined_call_operand.vmem [shape: f32[2,1,2048], index: 15, kind: input, shape index: {}]   ;;  %s7496_s16 = inlined_call_operand.vmem [shape: bf16[2,2048,64], index: 16, kind: input, shape index: {}]   ;;  %s7497_s17 = inlined_call_operand.vmem [shape: f32[2,1,64], index: 17, kind: input, shape index: {}]   ;;  %s7498_s18 = inlined_call_operand.vmem [shape: f32[2,1,64], index: 18, kind: input, shape index: {}]   ;;  %s7499_s19 = inlined_call_operand.vmem [shape: f32[2,1,64], index: 19, kind: input, shape index: {}]   ;;  %s7500_s20 = inlined_call_operand.vmem [shape: f32[1,64], index: 20, kind: input, shape index: {}]   ;;  %s7501_s21 = inlined_call_operand.<no memory space> [shape: f32[1,1], index: 21, kind: input, shape index: {}]   ;;  %s7502_s22 = inlined_call_operand.vmem [shape: f32[8,1], index: 22, kind: output, shape index: {}]  }
   0x1   :  { %7508 = sst [smem:[#allocation9_spill]] %s7480_s0  ;;  %v27_v0 = vstv %s7501_s21 }
   0x2   :  { %7509 = sst [smem:[#allocation10_spill]] %s7481_s1  ;;  %28 = vst [vmem:[#allocation3] sm:$0x1] %v27_v0 }
   0x3   :  { %7510 = sst [smem:[#allocation11_spill]] %s7482_s2 }
   0x4   :  { %7511 = sst [smem:[#allocation12_spill]] %s7483_s3 }
   0x5   :  { %7512 = sst [smem:[#allocation13_spill]] %s7484_s4 }
   0x6   :  { %7513 = sst [smem:[#allocation14_spill]] %s7485_s5 }
   0x7   :  { %7514 = sst [smem:[#allocation15_spill]] %s7486_s6 }
   0x8   :  { %7515 = sst [smem:[#allocation16_spill]] %s7487_s7 }
   0x9   :  { %7516 = sst [smem:[#allocation17_spill]] %s7488_s8 }
   0xa   :  { %7517 = sst [smem:[#allocation18_spill]] %s7489_s9 }
   0xb   :  { %7518 = sst [smem:[#allocation19_spill]] %s7490_s10 }
   0xc   :  { %7519 = sst [smem:[#allocation20_spill]] %s7494_s14 }
   0xd   :  { %7520 = sst [smem:[#allocation21_spill]] %s7500_s20 }
   0xe   :  { %7521 = sst [smem:[#allocation22_spill]] %s7502_s22 }
   0xf LB: > { %7522 = sst [smem:[#allocation4_spill]] %s6614_s29  ;;  %s6745_s30 = sadd.s32 4294967295, %s6614_s29   ;;  %s6614_s29 = sphi %s6739_s29, %s34_s29  }
  0x10   : > { %7523 = sst [smem:[#allocation5_spill]] %s6745_s30  ;;  %p5404_p0 = scmp.ge.s32.totalorder %s6614_s29, 1 }
  0x11   : > { %p743_p1 = scmp.lt.s32.totalorder %s6614_s29, 3 }
  0x13   : > { %p744_p2 = pnand %p5404_p0, %p743_p1 }
  0x15   : > { %747 = sbr.rel (%p744_p2) target bundleno = 2750 (0xabe), region = 108 }
  0x1c   : > { %p859_p3 = scmp.lt.s32.totalorder %s6745_s30, 1  ;;  %s7524_s5 = sld [smem:[#allocation13_spill]] }
  0x1d   : > { %s7525_s26 = sld [smem:[#allocation14_spill]]  ;;  %s7526_s28 = sld [smem:[#allocation15_spill]] }
  0x1e   : > { %s6751_s21 = scalar_select %p859_p3, %s6745_s30, 1 }
  0x1f   : > { %s7527_s7 = sld [smem:[#allocation16_spill]]  ;;  %s7529_s8 = sld [smem:[#allocation17_spill]] }
  0x20   : > { %s5675_s4 = sshll.u32 %s6751_s21, 8  ;;  %s5411_s0 = sshll.u32 %s6751_s21, 2 }
  0x21   : > { %s7531_s9 = sld [smem:[#allocation18_spill]]  ;;  %s5678_s27 = sshll.u32 %s6751_s21, 6 }
  0x22   : > { %s6758_s24 = scalar_lea.vmem %s7524_s5, %s5675_s4  ;;  %s7533_s10 = sld [smem:[#allocation19_spill]] }
  0x23   : > { %s6763_s2 = scalar_lea.vmem %s7525_s26, %s5675_s4  ;;  %s6768_s29 = scalar_lea.vmem %s7526_s28, %s5675_s4 }
  0x24   : > { %s7534_s14 = sld [smem:[#allocation20_spill]]  ;;  %s5418_s4 = sshll.u32 %s6751_s21, 4 }
  0x25   : > { %s6773_s30 = scalar_lea.vmem %s7527_s7, %s5411_s0  ;;  %s6778_s5 = scalar_lea.vmem %s7529_s8, %s5411_s0 }
  0x26   : > { %7528 = sst [smem:[#allocation6_spill]] %s6773_s30  ;;  %s5680_s20 = sshll.u32 %s6751_s21, 10 }
  0x27   : > { %7530 = sst [smem:[#allocation7_spill]] %s6778_s5  ;;  %s6783_s26 = scalar_lea.vmem %s7531_s9, %s5411_s0 }
  0x28   : > { %7532 = sst [smem:[#allocation8_spill]] %s6783_s26  ;;  %s6793_s7 = scalar_lea.vmem %s7533_s10, %s5678_s27 }
  0x29   : > { %s5679_s0 = sshll.u32 %s6751_s21, 9  ;;  %s6813_s27 = scalar_lea.vmem %s7495_s15, %s5418_s4 }
  0x2a   : > { %s6807_s26 = scalar_lea.vmem %s7534_s14, %s5679_s0  ;;  %s6819_s23 = scalar_lea.vmem %s7496_s16, %s5680_s20 }
  0x2b   : > { %s916_s6 = scalar_lea.vmem %s7497_s17, %s6751_s21  ;;  %s919_s0 = scalar_lea.vmem %s7498_s18, %s6751_s21 }
  0x2c   : > { %s922_s28 = scalar_lea.vmem %s7499_s19, %s6751_s21  ;;  %s7535_s4 = sld [smem:[#allocation5_spill]] }
  0x32   : > { %p5421_p4 = scmp.ne.s32.totalorder %s7535_s4, 0 }
  0x33   : > { %s7536_s22 = sld [smem:[#allocation9_spill]] (!%p5421_p4)  ;;  %v6616_v2 = vmov (!%p5421_p4), 0   ;;  %s7537_s8 = sld [smem:[#allocation11_spill]] (!%p5421_p4)  ;;  %vm953_vm0 = vcmask (!%p5421_p4), 523264  }
  0x34   : > { %927 = sbr.rel (%p5421_p4) target bundleno = 193 (0xc1), region = 112  ;;  %6458 = vset.pattern.permute.xlu0 (!%p5421_p4), %v6616_v2  ;;  %s7538_s9 = sld [smem:[#allocation12_spill]] (!%p5421_p4) }
  0x35   : > { %s7539_s4 = sld [smem:[#allocation10_spill]] (!%p5421_p4) }
  0x39   : > { %v928_v1 = vld [vmem:[%s7536_s22] sm:$0xff] (!%p5421_p4) }
  0x3a   : > { %940 = vperm.xlu0 (!%p5421_p4), %6458, %v928_v1   ;;  %v5423_v3 = vld [vmem:[%s7537_s8] ss:$0 sm:$0xff] (!%p5421_p4) }
  0x3b   : > { %v5422_v4 = vld [vmem:[%s7538_s9] ss:$0 sm:$0xff] }
  0x3c   : > { %v951_v7 = vld [vmem:[%s7539_s4] sm:$0xff] }
  0xb9   : > { %v941_v5 = vpop.permute.xlu0 %940 }
  0xba   : > { %v949_v6 = vmul.f32 %v5423_v3, %v941_v5 }
  0xbc   : > { %v950_v8 = vadd.f32 %v5422_v4, %v949_v6 }
  0xbe   : > { %v952_v9 = vadd.f32 %v951_v7, %v950_v8 }
  0xc0   : > { %954 = vst.msk [vmem:[#allocation2] sm:$0xff] %vm953_vm0, %v952_v9 }
  0xc1 PF: > { %v956_v10 = vld [vmem:[%s6758_s24] sm:$0xff]  ;;  %v957_v11 = vld [vmem:[%s6758_s24 + $0x8] sm:$0xff]  ;;  %v6617_v13 = vmov 0.0|0.0   ;;  %v958_v16 = vld [vmem:[%s6758_s24 + $0x10] sm:$0xff]  ;;  %vm6618_vm1 = vmmov 0   ;;  %v6619_v21 = vmov 0.0   ;;  %s7543_s3 = scalar_lea.vmem %s7491_s11, %s6751_s21  ;;  %s7544_s30 = scalar_lea.vmem %s7492_s12, %s6751_s21 }
  0xc2   : > { %v964_v12 = vld [vmem:[%s6758_s24 + $0x40] sm:$0xff]  ;;  %6289 = vmatprep.subr.bf16.mxu0 %v6617_v13  ;;  %6301 = vmatprep.subr.bf16.mxu1 %v6617_v13  ;;  %v6290_v14 = vpack.c.bf16 %v957_v11, %v956_v10  ;;  %v965_v15 = vld [vmem:[%s6758_s24 + $0x48] sm:$0xff]  ;;  %v959_v17 = vld [vmem:[%s6758_s24 + $0x18] sm:$0xff]  ;;  %vm1016_vm2 = vcmask 523264   ;;  %s7540_s14 = sld [smem:[#allocation6_spill]]  ;;  %vm1984_vm3 = vcmask 130048   ;;  %s7545_s5 = scalar_lea.vmem %s7493_s13, %s6751_s21 }
  0xc3   : > { %v6302_v18 = vpack.c.bf16 %v965_v15, %v964_v12  ;;  %v966_v19 = vld [vmem:[%s6758_s24 + $0x50] sm:$0xff]  ;;  %v967_v20 = vld [vmem:[%s6758_s24 + $0x58] sm:$0xff]  ;;  %6009 = vmatprep.mubr.msk.f32.mxu0 %vm6618_vm1, %v6619_v21  ;;  %6028 = vmatprep.mubr.msk.f32.mxu1 %vm6618_vm1, %v6619_v21  ;;  %v6293_v22 = vpack.c.bf16 %v959_v17, %v958_v16  ;;  %v960_v24 = vld [vmem:[%s6758_s24 + $0x20] sm:$0xff]  ;;  %vm2289_vm4 = vcmask 64512   ;;  %s7546_s25 = sld [smem:[#allocation5_spill]] }
  0xc4   : > { %6291 = vmatpush3.bf16.msra.mxu0 %v6290_v14  ;;  %v6305_v23 = vpack.c.bf16 %v967_v20, %v966_v19  ;;  %v961_v25 = vld [vmem:[%s6758_s24 + $0x28] sm:$0xff]  ;;  %v968_v26 = vld [vmem:[%s6758_s24 + $0x60] sm:$0xff]  ;;  %v962_v30 = vld [vmem:[%s6758_s24 + $0x30] sm:$0xff] }
  0xc5   : > { %6303 = vmatpush3.bf16.msra.mxu1 %v6302_v18  ;;  %6292 = vmatprep.subr.bf16.mxu0 %v6617_v13  ;;  %v969_v27 = vld [vmem:[%s6758_s24 + $0x68] sm:$0xff]  ;;  %v6296_v28 = vpack.c.bf16 %v961_v25, %v960_v24  ;;  %v963_v31 = vld [vmem:[%s6758_s24 + $0x38] sm:$0xff]  ;;  %v970_v32 = vld [vmem:[%s6758_s24 + $0x70] sm:$0xff] }
  0xc6   : > { %6304 = vmatprep.subr.bf16.mxu1 %v6617_v13  ;;  %v6308_v29 = vpack.c.bf16 %v969_v27, %v968_v26  ;;  %v971_v33 = vld [vmem:[%s6758_s24 + $0x78] sm:$0xff]  ;;  %v6299_v34 = vpack.c.bf16 %v963_v31, %v962_v30  ;;  %v972_v36 = vld [vmem:[%s6758_s24 + $0x80] sm:$0xff]  ;;  %v973_v37 = vld [vmem:[%s6758_s24 + $0x88] sm:$0xff] }
  0xc7   : > { %v6311_v35 = vpack.c.bf16 %v971_v33, %v970_v32  ;;  %v980_v38 = vld [vmem:[%s6758_s24 + $0xc0] sm:$0xff]  ;;  %v981_v39 = vld [vmem:[%s6758_s24 + $0xc8] sm:$0xff]  ;;  %v6314_v41 = vpack.c.bf16 %v973_v37, %v972_v36  ;;  %v974_v43 = vld [vmem:[%s6758_s24 + $0x90] sm:$0xff] }
  0xc8   : > { %6294 = vmatpush3.bf16.msra.mxu0 %v6293_v22  ;;  %v6878_v40 = vld [vmem:[#allocation2] sm:$0xff]  ;;  %v6326_v42 = vpack.c.bf16 %v981_v39, %v980_v38  ;;  %v975_v44 = vld [vmem:[%s6758_s24 + $0x98] sm:$0xff]  ;;  %v982_v45 = vld [vmem:[%s6758_s24 + $0xd0] sm:$0xff] }
  0xc9   : > { %6306 = vmatpush3.bf16.msra.mxu1 %v6305_v23  ;;  %6295 = vmatprep.subr.bf16.mxu0 %v6617_v13  ;;  %v983_v46 = vld [vmem:[%s6758_s24 + $0xd8] sm:$0xff]  ;;  %v6317_v47 = vpack.c.bf16 %v975_v44, %v974_v43  ;;  %v976_v49 = vld [vmem:[%s6758_s24 + $0xa0] sm:$0xff]  ;;  %v977_v50 = vld [vmem:[%s6758_s24 + $0xa8] sm:$0xff]  ;;  %p5670_p5 = scmp.ne.s32.totalorder %s7546_s25, 1 }
  0xca   : > { %6307 = vmatprep.subr.bf16.mxu1 %v6617_v13  ;;  %v6329_v48 = vpack.c.bf16 %v983_v46, %v982_v45  ;;  %v984_v51 = vld [vmem:[%s6758_s24 + $0xe0] sm:$0xff]  ;;  %v985_v52 = vld [vmem:[%s6758_s24 + $0xe8] sm:$0xff]  ;;  %v978_v53 = vld [vmem:[%s6758_s24 + $0xb0] sm:$0xff]  ;;  %v6320_v55 = vpack.c.bf16 %v977_v50, %v976_v49  ;;  %vm5209_vm5 = vcmask (!%p5670_p5), 7168  }
  0xcb   : > { %v979_v54 = vld [vmem:[%s6758_s24 + $0xb8] sm:$0xff]  ;;  %v986_v56 = vld [vmem:[%s6758_s24 + $0xf0] sm:$0xff]  ;;  %v6332_v58 = vpack.c.bf16 %v985_v52, %v984_v51  ;;  %v1304_v59 = vld [vmem:[%s6763_s2] sm:$0xff] }
  0xcc   : > { %6297 = vmatpush3.bf16.msra.mxu0 %v6296_v28  ;;  %v987_v57 = vld [vmem:[%s6758_s24 + $0xf8] sm:$0xff]  ;;  %v1305_v60 = vld [vmem:[%s6763_s2 + $0x8] sm:$0xff]  ;;  %v6323_v61 = vpack.c.bf16 %v979_v54, %v978_v53  ;;  %v1312_v62 = vld [vmem:[%s6763_s2 + $0x40] sm:$0xff]  ;;  %s7541_s24 = sld [smem:[#allocation7_spill]] }
  0xcd   : > { %6309 = vmatpush3.bf16.msra.mxu1 %v6308_v29  ;;  %6298 = vmatprep.subr.bf16.mxu0 %v6617_v13  ;;  %v1313_v63 = vld [vmem:[%s6763_s2 + $0x48] sm:$0xff]  ;;  %v6335_v0 = vpack.c.bf16 %v987_v57, %v986_v56  ;;  %v1306_v1 = vld [vmem:[%s6763_s2 + $0x10] sm:$0xff]  ;;  %v1307_v2 = vld [vmem:[%s6763_s2 + $0x18] sm:$0xff]  ;;  %v6338_v3 = vpack.c.bf16 %v1305_v60, %v1304_v59 }
  0xce   : > { %6310 = vmatprep.subr.bf16.mxu1 %v6617_v13  ;;  %v1314_v4 = vld [vmem:[%s6763_s2 + $0x50] sm:$0xff]  ;;  %v1315_v5 = vld [vmem:[%s6763_s2 + $0x58] sm:$0xff]  ;;  %v6350_v6 = vpack.c.bf16 %v1313_v63, %v1312_v62  ;;  %v1308_v7 = vld [vmem:[%s6763_s2 + $0x20] sm:$0xff]  ;;  %v6341_v9 = vpack.c.bf16 %v1307_v2, %v1306_v1 }
  0xcf   : > { %v1309_v8 = vld [vmem:[%s6763_s2 + $0x28] sm:$0xff]  ;;  %v1316_v10 = vld [vmem:[%s6763_s2 + $0x60] sm:$0xff]  ;;  %v6353_v12 = vpack.c.bf16 %v1315_v5, %v1314_v4  ;;  %v1310_v14 = vld [vmem:[%s6763_s2 + $0x30] sm:$0xff] }
  0xd0   : > { %6300 = vmatpush3.bf16.msra.mxu0 %v6299_v34  ;;  %v1317_v11 = vld [vmem:[%s6763_s2 + $0x68] sm:$0xff]  ;;  %v1311_v15 = vld [vmem:[%s6763_s2 + $0x38] sm:$0xff]  ;;  %v6344_v16 = vpack.c.bf16 %v1309_v8, %v1308_v7  ;;  %v1318_v17 = vld [vmem:[%s6763_s2 + $0x70] sm:$0xff] }
  0xd1   : > { %6312 = vmatpush3.bf16.msra.mxu1 %v6311_v35  ;;  %6313 = vmatprep.subr.bf16.mxu0 %v6617_v13  ;;  %v1319_v18 = vld [vmem:[%s6763_s2 + $0x78] sm:$0xff]  ;;  %v6356_v19 = vpack.c.bf16 %v1317_v11, %v1316_v10  ;;  %v1320_v20 = vld [vmem:[%s6763_s2 + $0x80] sm:$0xff]  ;;  %v1321_v22 = vld [vmem:[%s6763_s2 + $0x88] sm:$0xff]  ;;  %v6347_v23 = vpack.c.bf16 %v1311_v15, %v1310_v14 }
  0xd2   : > { %6325 = vmatprep.subr.bf16.mxu1 %v6617_v13  ;;  %v1328_v24 = vld [vmem:[%s6763_s2 + $0xc0] sm:$0xff]  ;;  %v1329_v25 = vld [vmem:[%s6763_s2 + $0xc8] sm:$0xff]  ;;  %v6359_v26 = vpack.c.bf16 %v1319_v18, %v1318_v17  ;;  %v1322_v27 = vld [vmem:[%s6763_s2 + $0x90] sm:$0xff]  ;;  %v6362_v29 = vpack.c.bf16 %v1321_v22, %v1320_v20 }
  0xd3   : > { %6010 = vmatmul.mubr.msk.f32.vlgmr.msra.gmra.mrb[0].mxu0 %vm1016_vm2, %v6878_v40  ;;  %v1323_v28 = vld [vmem:[%s6763_s2 + $0x98] sm:$0xff]  ;;  %v1330_v30 = vld [vmem:[%s6763_s2 + $0xd0] sm:$0xff]  ;;  %v6374_v32 = vpack.c.bf16 %v1329_v25, %v1328_v24  ;;  %v1324_v33 = vld [vmem:[%s6763_s2 + $0xa0] sm:$0xff] }
  0xd4   : > { %6029 = vmatmul.mubr.msk.f32.vlgmr.msra.gmra.mrb[0].mxu1 %vm1016_vm2, %v6878_v40  ;;  %6315 = vmatpush3.bf16.msra.mxu0 %v6314_v41  ;;  %v1331_v31 = vld [vmem:[%s6763_s2 + $0xd8] sm:$0xff]  ;;  %v1325_v34 = vld [vmem:[%s6763_s2 + $0xa8] sm:$0xff]  ;;  %v6365_v35 = vpack.c.bf16 %v1323_v28, %v1322_v27  ;;  %v1332_v36 = vld [vmem:[%s6763_s2 + $0xe0] sm:$0xff] }
  0xd5   : > { %6327 = vmatpush3.bf16.msra.mxu1 %v6326_v42  ;;  %6316 = vmatprep.subr.bf16.mxu0 %v6617_v13  ;;  %v1333_v37 = vld [vmem:[%s6763_s2 + $0xe8] sm:$0xff]  ;;  %v6377_v38 = vpack.c.bf16 %v1331_v31, %v1330_v30  ;;  %v1326_v39 = vld [vmem:[%s6763_s2 + $0xb0] sm:$0xff]  ;;  %v1327_v41 = vld [vmem:[%s6763_s2 + $0xb8] sm:$0xff]  ;;  %v6368_v42 = vpack.c.bf16 %v1325_v34, %v1324_v33 }
  0xd6   : > { %6328 = vmatprep.subr.bf16.mxu1 %v6617_v13  ;;  %6047 = vmatprep.mubr.msk.f32.mxu0 %vm6618_vm1, %v6619_v21  ;;  %v1334_v43 = vld [vmem:[%s6763_s2 + $0xf0] sm:$0xff]  ;;  %v1335_v44 = vld [vmem:[%s6763_s2 + $0xf8] sm:$0xff]  ;;  %v6380_v45 = vpack.c.bf16 %v1333_v37, %v1332_v36  ;;  %v1644_v46 = vld [vmem:[%s6768_s29] sm:$0xff] }
  0xd7   : > { %6066 = vmatprep.mubr.msk.f32.mxu1 %vm6618_vm1, %v6619_v21  ;;  %v1652_v49 = vld [vmem:[%s6768_s29 + $0x40] sm:$0xff]  ;;  %v1653_v50 = vld [vmem:[%s6768_s29 + $0x48] sm:$0xff]  ;;  %v6383_v51 = vpack.c.bf16 %v1335_v44, %v1334_v43  ;;  %v1646_v54 = vld [vmem:[%s6768_s29 + $0x10] sm:$0xff] }
  0xd8   : > { %6318 = vmatpush3.bf16.msra.mxu0 %v6317_v47  ;;  %v1645_v47 = vld [vmem:[%s6768_s29 + $0x8] sm:$0xff]  ;;  %v6398_v53 = vpack.c.bf16 %v1653_v50, %v1652_v49  ;;  %v1654_v56 = vld [vmem:[%s6768_s29 + $0x50] sm:$0xff]  ;;  %v1648_v60 = vld [vmem:[%s6768_s29 + $0x20] sm:$0xff] }
  0xd9   : > { %6330 = vmatpush3.bf16.msra.mxu1 %v6329_v48  ;;  %6319 = vmatprep.subr.bf16.mxu0 %v6617_v13  ;;  %v6371_v48 = vpack.c.bf16 %v1327_v41, %v1326_v39  ;;  %v6386_v52 = vpack.c.bf16 %v1645_v47, %v1644_v46  ;;  %v1656_v62 = vld [vmem:[%s6768_s29 + $0x60] sm:$0xff]  ;;  %v1650_v1 = vld [vmem:[%s6768_s29 + $0x30] sm:$0xff]  ;;  %v1651_v2 = vld [vmem:[%s6768_s29 + $0x38] sm:$0xff] }
  0xda   : > { %6331 = vmatprep.subr.bf16.mxu1 %v6617_v13  ;;  %v1658_v4 = vld [vmem:[%s6768_s29 + $0x70] sm:$0xff]  ;;  %v1659_v5 = vld [vmem:[%s6768_s29 + $0x78] sm:$0xff]  ;;  %v1660_v7 = vld [vmem:[%s6768_s29 + $0x80] sm:$0xff] }
  0xdb   : > { %v1661_v8 = vld [vmem:[%s6768_s29 + $0x88] sm:$0xff]  ;;  %v6407_v10 = vpack.c.bf16 %v1659_v5, %v1658_v4  ;;  %v1662_v15 = vld [vmem:[%s6768_s29 + $0x90] sm:$0xff]  ;;  %v1664_v22 = vld [vmem:[%s6768_s29 + $0xa0] sm:$0xff] }
  0xdc   : > { %6321 = vmatpush3.bf16.msra.mxu0 %v6320_v55  ;;  %v1647_v55 = vld [vmem:[%s6768_s29 + $0x18] sm:$0xff]  ;;  %v1669_v11 = vld [vmem:[%s6768_s29 + $0xc8] sm:$0xff]  ;;  %v1670_v17 = vld [vmem:[%s6768_s29 + $0xd0] sm:$0xff] }
  0xdd   : > { %6333 = vmatpush3.bf16.msra.mxu1 %v6332_v58  ;;  %6322 = vmatprep.subr.bf16.mxu0 %v6617_v13  ;;  %v6389_v57 = vpack.c.bf16 %v1647_v55, %v1646_v54  ;;  %v1655_v58 = vld [vmem:[%s6768_s29 + $0x58] sm:$0xff]  ;;  %v1672_v24 = vld [vmem:[%s6768_s29 + $0xe0] sm:$0xff]  ;;  %v1666_v27 = vld [vmem:[%s6768_s29 + $0xb0] sm:$0xff] }
  0xde   : > { %6334 = vmatprep.subr.bf16.mxu1 %v6617_v13  ;;  %v6401_v59 = vpack.c.bf16 %v1655_v58, %v1654_v56  ;;  %v1667_v28 = vld [vmem:[%s6768_s29 + $0xb8] sm:$0xff]  ;;  %v1674_v30 = vld [vmem:[%s6768_s29 + $0xf0] sm:$0xff]  ;;  %v5424_v43 = vld [vmem:[%s7540_s14] ss:$0 sm:$0xff] }
  0xdf   : > { %v1675_v31 = vld [vmem:[%s6768_s29 + $0xf8] sm:$0xff]  ;;  %v5425_v44 = vld [vmem:[%s7540_s14 + $0x1] ss:$0 sm:$0xff]  ;;  %v5426_v56 = vld [vmem:[%s7540_s14 + $0x2] ss:$0 sm:$0xff] }
  0xe0   : > { %6324 = vmatpush3.bf16.msra.mxu0 %v6323_v61  ;;  %v1649_v61 = vld [vmem:[%s6768_s29 + $0x28] sm:$0xff]  ;;  %v6431_v33 = vpack.c.bf16 %v1675_v31, %v1674_v30  ;;  %v5433_v46 = vld [vmem:[%s7541_s24 + $0x1] ss:$0 sm:$0xff]  ;;  %v5434_v58 = vld [vmem:[%s7541_s24 + $0x2] ss:$0 sm:$0xff] }
  0xe1   : > { %6336 = vmatpush3.bf16.msra.mxu1 %v6335_v0  ;;  %6337 = vmatprep.subr.bf16.mxu0 %v6617_v13  ;;  %v6392_v63 = vpack.c.bf16 %v1649_v61, %v1648_v60  ;;  %v1657_v0 = vld [vmem:[%s6768_s29 + $0x68] sm:$0xff] }
  0xe2   : > { %6349 = vmatprep.subr.bf16.mxu1 %v6617_v13 }
  0xe3   : > { %6048 = vmatmul.mubr.msk.f32.vlgmr.msra.gmra.mrb[2].mxu0 %vm1016_vm2, %v6878_v40 }
  0xe4   : > { %6067 = vmatmul.mubr.msk.f32.vlgmr.msra.gmra.mrb[2].mxu1 %vm1016_vm2, %v6878_v40  ;;  %6339 = vmatpush3.bf16.msra.mxu0 %v6338_v3  ;;  %v6404_v3 = vpack.c.bf16 %v1657_v0, %v1656_v62 }
  0xe5   : > { %6351 = vmatpush3.bf16.msra.mxu1 %v6350_v6  ;;  %6340 = vmatprep.subr.bf16.mxu0 %v6617_v13  ;;  %v6395_v6 = vpack.c.bf16 %v1651_v2, %v1650_v1 }
  0xe6   : > { %6352 = vmatprep.subr.bf16.mxu1 %v6617_v13  ;;  %6085 = vmatprep.mubr.msk.f32.mxu0 %vm6618_vm1, %v6619_v21 }
  0xe7   : > { %6104 = vmatprep.mubr.msk.f32.mxu1 %vm6618_vm1, %v6619_v21 }
  0xe8   : > { %6342 = vmatpush3.bf16.msra.mxu0 %v6341_v9  ;;  %v1668_v9 = vld [vmem:[%s6768_s29 + $0xc0] sm:$0xff] }
  0xe9   : > { %6354 = vmatpush3.bf16.msra.mxu1 %v6353_v12  ;;  %6343 = vmatprep.subr.bf16.mxu0 %v6617_v13  ;;  %v6410_v12 = vpack.c.bf16 %v1661_v8, %v1660_v7  ;;  %v6422_v14 = vpack.c.bf16 %v1669_v11, %v1668_v9 }
  0xea   : > { %6355 = vmatprep.subr.bf16.mxu1 %v6617_v13 }
  0xec   : > { %6345 = vmatpush3.bf16.msra.mxu0 %v6344_v16  ;;  %v1663_v16 = vld [vmem:[%s6768_s29 + $0x98] sm:$0xff] }
  0xed   : > { %6357 = vmatpush3.bf16.msra.mxu1 %v6356_v19  ;;  %6346 = vmatprep.subr.bf16.mxu0 %v6617_v13  ;;  %v6413_v18 = vpack.c.bf16 %v1663_v16, %v1662_v15  ;;  %v1671_v19 = vld [vmem:[%s6768_s29 + $0xd8] sm:$0xff] }
  0xee   : > { %6358 = vmatprep.subr.bf16.mxu1 %v6617_v13  ;;  %v6425_v20 = vpack.c.bf16 %v1671_v19, %v1670_v17 }
  0xf0   : > { %6348 = vmatpush3.bf16.msra.mxu0 %v6347_v23  ;;  %v1665_v23 = vld [vmem:[%s6768_s29 + $0xa8] sm:$0xff] }
  0xf1   : > { %6360 = vmatpush3.bf16.msra.mxu1 %v6359_v26  ;;  %6361 = vmatprep.subr.bf16.mxu0 %v6617_v13  ;;  %v6416_v25 = vpack.c.bf16 %v1665_v23, %v1664_v22  ;;  %v1673_v26 = vld [vmem:[%s6768_s29 + $0xe8] sm:$0xff]  ;;  %s7542_s29 = sld [smem:[#allocation8_spill]] }
  0xf2   : > { %6373 = vmatprep.subr.bf16.mxu1 %v6617_v13 }
  0xf3   : > { %6086 = vmatmul.mubr.msk.f32.vlgmr.msra.gmra.mrb[4].mxu0 %vm1016_vm2, %v6878_v40 }
  0xf4   : > { %6105 = vmatmul.mubr.msk.f32.vlgmr.msra.gmra.mrb[4].mxu1 %vm1016_vm2, %v6878_v40  ;;  %6363 = vmatpush3.bf16.msra.mxu0 %v6362_v29  ;;  %v6428_v29 = vpack.c.bf16 %v1673_v26, %v1672_v24 }
  0xf5   : > { %6375 = vmatpush3.bf16.msra.mxu1 %v6374_v32  ;;  %6364 = vmatprep.subr.bf16.mxu0 %v6617_v13  ;;  %v6419_v32 = vpack.c.bf16 %v1667_v28, %v1666_v27 }
  0xf6   : > { %6376 = vmatprep.subr.bf16.mxu1 %v6617_v13  ;;  %6123 = vmatprep.mubr.msk.f32.mxu0 %vm6618_vm1, %v6619_v21 }
  0xf7   : > { %6142 = vmatprep.mubr.msk.f32.mxu1 %vm6618_vm1, %v6619_v21  ;;  %v5441_v7 = vld [vmem:[%s7542_s29 + $0x1] ss:$0 sm:$0xff] }
  0xf8   : > { %6366 = vmatpush3.bf16.msra.mxu0 %v6365_v35 }
  0xf9   : > { %6378 = vmatpush3.bf16.msra.mxu1 %v6377_v38  ;;  %6367 = vmatprep.subr.bf16.mxu0 %v6617_v13 }
  0xfa   : > { %6379 = vmatprep.subr.bf16.mxu1 %v6617_v13 }
  0xfc   : > { %6369 = vmatpush3.bf16.msra.mxu0 %v6368_v42 }
  0xfd   : > { %6381 = vmatpush3.bf16.msra.mxu1 %v6380_v45  ;;  %6370 = vmatprep.subr.bf16.mxu0 %v6617_v13  ;;  %v5432_v45 = vld [vmem:[%s7541_s24] ss:$0 sm:$0xff] }
  0xfe   : > { %6382 = vmatprep.subr.bf16.mxu1 %v6617_v13 }
 0x100   : > { %6372 = vmatpush3.bf16.msra.mxu0 %v6371_v48 }
 0x101   : > { %6384 = vmatpush3.bf16.msra.mxu1 %v6383_v51  ;;  %6385 = vmatprep.subr.bf16.mxu0 %v6617_v13 }
 0x102   : > { %6397 = vmatprep.subr.bf16.mxu1 %v6617_v13 }
 0x103   : > { %6124 = vmatmul.mubr.msk.f32.vlgmr.msra.gmra.mrb[6].mxu0 %vm1016_vm2, %v6878_v40 }
 0x104   : > { %6143 = vmatmul.mubr.msk.f32.vlgmr.msra.gmra.mrb[6].mxu1 %vm1016_vm2, %v6878_v40  ;;  %6387 = vmatpush3.bf16.msra.mxu0 %v6386_v52 }
 0x105   : > { %6399 = vmatpush3.bf16.msra.mxu1 %v6398_v53  ;;  %6388 = vmatprep.subr.bf16.mxu0 %v6617_v13 }
 0x106   : > { %6400 = vmatprep.subr.bf16.mxu1 %v6617_v13  ;;  %6161 = vmatprep.mubr.msk.f32.mxu0 %vm6618_vm1, %v6619_v21 }
 0x107   : > { %6180 = vmatprep.mubr.msk.f32.mxu1 %vm6618_vm1, %v6619_v21 }
 0x108   : > { %6390 = vmatpush3.bf16.msra.mxu0 %v6389_v57  ;;  %v5427_v57 = vld [vmem:[%s7540_s14 + $0x3] ss:$0 sm:$0xff] }
 0x109   : > { %6402 = vmatpush3.bf16.msra.mxu1 %v6401_v59  ;;  %6391 = vmatprep.subr.bf16.mxu0 %v6617_v13  ;;  %v5435_v59 = vld [vmem:[%s7541_s24 + $0x3] ss:$0 sm:$0xff]  ;;  %s7547_s24 = sld [smem:[#allocation21_spill]] (!%p5670_p5) }
 0x10a   : > { %6403 = vmatprep.subr.bf16.mxu1 %v6617_v13 }
 0x10c   : > { %6393 = vmatpush3.bf16.msra.mxu0 %v6392_v63 }
 0x10d   : > { %6405 = vmatpush3.bf16.msra.mxu1 %v6404_v3  ;;  %6394 = vmatprep.subr.bf16.mxu0 %v6617_v13 }
 0x10e   : > { %6406 = vmatprep.subr.bf16.mxu1 %v6617_v13 }
 0x110   : > { %6396 = vmatpush3.bf16.msra.mxu0 %v6395_v6  ;;  %v5440_v6 = vld [vmem:[%s7542_s29] ss:$0 sm:$0xff] }
 0x111   : > { %6408 = vmatpush3.bf16.msra.mxu1 %v6407_v10  ;;  %6409 = vmatprep.subr.bf16.mxu0 %v6617_v13 }
 0x112   : > { %6421 = vmatprep.subr.bf16.mxu1 %v6617_v13 }
 0x113   : > { %6162 = vmatmul.mubr.msk.f32.vlgmr.msra.gmra.mrb[8].mxu0 %vm1016_vm2, %v6878_v40 }
 0x114   : > { %6181 = vmatmul.mubr.msk.f32.vlgmr.msra.gmra.mrb[8].mxu1 %vm1016_vm2, %v6878_v40  ;;  %6411 = vmatpush3.bf16.msra.mxu0 %v6410_v12 }
 0x115   : > { %6423 = vmatpush3.bf16.msra.mxu1 %v6422_v14  ;;  %6412 = vmatprep.subr.bf16.mxu0 %v6617_v13 }
 0x116   : > { %6424 = vmatprep.subr.bf16.mxu1 %v6617_v13  ;;  %6199 = vmatprep.mubr.msk.f32.mxu0 %vm6618_vm1, %v6619_v21 }
 0x117   : > { %6218 = vmatprep.mubr.msk.f32.mxu1 %vm6618_vm1, %v6619_v21 }
 0x118   : > { %6414 = vmatpush3.bf16.msra.mxu0 %v6413_v18 }
 0x119   : > { %6426 = vmatpush3.bf16.msra.mxu1 %v6425_v20  ;;  %6415 = vmatprep.subr.bf16.mxu0 %v6617_v13 }
 0x11a   : > { %6427 = vmatprep.subr.bf16.mxu1 %v6617_v13 }
 0x11c   : > { %6417 = vmatpush3.bf16.msra.mxu0 %v6416_v25 }
 0x11d   : > { %6429 = vmatpush3.bf16.msra.mxu1 %v6428_v29  ;;  %6418 = vmatprep.subr.bf16.mxu0 %v6617_v13 }
 0x11e   : > { %6430 = vmatprep.subr.bf16.mxu1 %v6617_v13 }
 0x120   : > { %6420 = vmatpush3.bf16.msra.mxu0 %v6419_v32 }
 0x121   : > { %6432 = vmatpush3.bf16.msra.mxu1 %v6431_v33  ;;  %6221 = vmatprep.subr.mxu0 %v6619_v21 }
 0x122   : > { %6226 = vmatprep.subr.mxu1 %v6619_v21 }
 0x123   : > { %6200 = vmatmul.mubr.msk.f32.vlgmr.msra.gmra.mrb[10].mxu0 %vm1016_vm2, %v6878_v40 }
 0x124   : > { %6219 = vmatmul.mubr.msk.f32.vlgmr.msra.gmra.mrb[10].mxu1 %vm1016_vm2, %v6878_v40  ;;  %6223 = vmatprep.mubr.msk.f32.mxu0 %vm6618_vm1, %v6619_v21 }
 0x125   : > { %6228 = vmatprep.mubr.msk.f32.mxu1 %vm6618_vm1, %v6619_v21 }
 0x1a6   : > { %v1086_v34 = vpop.f32.mrb[0].mxu0 }
 0x1a7   : > { %v6011_v35 = vpop.f32.mrb[1].mxu0  ;;  %v1156_v36 = vpop.f32.mrb[0].mxu1  ;;  %v1087_v47 = vadd.f32 %v5424_v43, %v1086_v34 }
 0x1a8   : > { %v6030_v37 = vpop.f32.mrb[1].mxu1  ;;  %v1157_v48 = vadd.f32 %v5425_v44, %v1156_v36 }
 0x1a9   : > { %v1300_v54 = vmul.f32 0.25, %v1087_v47 }
 0x1aa   : > { %v1301_v55 = vmul.f32 0.25, %v1157_v48 }
 0x1b6   : > { %v1226_v38 = vpop.f32.mrb[2].mxu0 }
 0x1b7   : > { %v6049_v39 = vpop.f32.mrb[3].mxu0  ;;  %v1296_v41 = vpop.f32.mrb[2].mxu1  ;;  %v1227_v60 = vadd.f32 %v5426_v56, %v1226_v38 }
 0x1b8   : > { %v6068_v42 = vpop.f32.mrb[3].mxu1  ;;  %v1297_v62 = vadd.f32 %v5427_v57, %v1296_v41 }
 0x1b9   : > { %v1302_v4 = vmul.f32 0.25, %v1227_v60 }
 0x1ba   : > { %v1303_v5 = vmul.f32 0.25, %v1297_v62 }
 0x1c6   : > { %v1430_v40 = vpop.f32.mrb[4].mxu0 }
 0x1c7   : > { %v1431_v49 = vadd.f32 %v5432_v45, %v1430_v40  ;;  %v1500_v50 = vpop.f32.mrb[4].mxu1  ;;  %v6087_v51 = vpop.f32.mrb[5].mxu0 }
 0x1c8   : > { %v1501_v52 = vadd.f32 %v5433_v46, %v1500_v50  ;;  %v6106_v53 = vpop.f32.mrb[5].mxu1 }
 0x1c9   : > { %6222 = vmatpush3.xpose.msk.msra.mxu0 %vm1984_vm3, %v1431_v49 }
 0x1ca   : > { %6227 = vmatpush3.xpose.msk.msra.mxu1 %vm1984_vm3, %v1501_v52  ;;  %6231 = vmatprep.subr.mxu0 %v6619_v21 }
 0x1cb   : > { %6236 = vmatprep.subr.mxu1 %v6619_v21 }
 0x1cc   : > { %6224 = vmatmul.mubr.msk.f32.vlgmr.msra.gmra.mrb[12].mxu0 %vm1984_vm3, %v1300_v54  ;;  %v5442_v54 = vld [vmem:[%s7542_s29 + $0x2] ss:$0 sm:$0xff] }
 0x1cd   : > { %6229 = vmatmul.mubr.msk.f32.vlgmr.msra.gmra.mrb[12].mxu1 %vm1984_vm3, %v1301_v55  ;;  %6233 = vmatprep.mubr.msk.f32.mxu0 %vm6618_vm1, %v6619_v21 }
 0x1ce   : > { %6238 = vmatprep.mubr.msk.f32.mxu1 %vm6618_vm1, %v6619_v21 }
 0x1d6   : > { %v1570_v61 = vpop.f32.mrb[6].mxu0 }
 0x1d7   : > { %v1571_v63 = vadd.f32 %v5434_v58, %v1570_v61  ;;  %v1640_v0 = vpop.f32.mrb[6].mxu1  ;;  %v6125_v1 = vpop.f32.mrb[7].mxu0  ;;  %v5443_v58 = vld [vmem:[%s7542_s29 + $0x3] ss:$0 sm:$0xff] }
 0x1d8   : > { %v1641_v2 = vadd.f32 %v5435_v59, %v1640_v0  ;;  %v6144_v3 = vpop.f32.mrb[7].mxu1  ;;  %v2626_v0 = vld [vmem:[%s6793_s7] sm:$0xff]  ;;  %v2627_v1 = vld [vmem:[%s6793_s7 + $0x8] sm:$0xff] }
 0x1d9   : > { %6232 = vmatpush3.xpose.msk.msra.mxu0 %vm1984_vm3, %v1571_v63  ;;  %v6434_v3 = vpack.c.bf16 %v2627_v1, %v2626_v0  ;;  %v3005_v1 = vld [vmem:[%s6807_s26 + $0x100] sm:$0xff] }
 0x1da   : > { %6237 = vmatpush3.xpose.msk.msra.mxu1 %vm1984_vm3, %v1641_v2  ;;  %6241 = vmatprep.subr.mxu0 %v6619_v21 }
 0x1db   : > { %6246 = vmatprep.subr.mxu1 %v6619_v21 }
 0x1dc   : > { %6234 = vmatmul.mubr.msk.f32.vlgmr.msra.gmra.mrb[14].mxu0 %vm1984_vm3, %v1302_v4 }
 0x1dd   : > { %6239 = vmatmul.mubr.msk.f32.vlgmr.msra.gmra.mrb[14].mxu1 %vm1984_vm3, %v1303_v5  ;;  %6243 = vmatprep.mubr.msk.f32.mxu0 %vm6618_vm1, %v6619_v21 }
 0x1de   : > { %6248 = vmatprep.mubr.msk.f32.mxu1 %vm6618_vm1, %v6619_v21 }
 0x1e6   : > { %v1770_v8 = vpop.f32.mrb[8].mxu0 }
 0x1e7   : > { %v1771_v9 = vadd.f32 %v5440_v6, %v1770_v8  ;;  %v6163_v10 = vpop.f32.mrb[9].mxu0  ;;  %v1840_v11 = vpop.f32.mrb[8].mxu1  ;;  %v2629_v8 = vld [vmem:[%s6793_s7 + $0x18] sm:$0xff] }
 0x1e8   : > { %v1841_v12 = vadd.f32 %v5441_v7, %v1840_v11  ;;  %v6182_v14 = vpop.f32.mrb[9].mxu1  ;;  %v2628_v7 = vld [vmem:[%s6793_s7 + $0x10] sm:$0xff]  ;;  %v2630_v10 = vld [vmem:[%s6793_s7 + $0x20] sm:$0xff]  ;;  %v2631_v11 = vld [vmem:[%s6793_s7 + $0x28] sm:$0xff] }
 0x1e9   : > { %6242 = vmatpush3.msra.mxu0 %v1771_v9  ;;  %v6437_v9 = vpack.c.bf16 %v2629_v8, %v2628_v7  ;;  %v2632_v14 = vld [vmem:[%s6793_s7 + $0x30] sm:$0xff] }
 0x1ea   : > { %6247 = vmatpush3.msra.mxu1 %v1841_v12  ;;  %6251 = vmatprep.subr.mxu0 %v6619_v21  ;;  %v6440_v12 = vpack.c.bf16 %v2631_v11, %v2630_v10  ;;  %v3029_v10 = vld [vmem:[%s6807_s26 + $0x1c0] sm:$0xff]  ;;  %v3022_v11 = vld [vmem:[%s6807_s26 + $0x188] sm:$0xff] }
 0x1eb   : > { %6256 = vmatprep.subr.mxu1 %v6619_v21 }
 0x1f6   : > { %v1910_v15 = vpop.f32.mrb[10].mxu0 }
 0x1f7   : > { %v7078_v16 = vpop.f32.mrb[10].mxu1  ;;  %v6201_v17 = vpop.f32.mrb[11].mxu0  ;;  %v1911_v57 = vadd.f32 %v5442_v54, %v1910_v15  ;;  %v2633_v15 = vld [vmem:[%s6793_s7 + $0x38] sm:$0xff] }
 0x1f8   : > { %v6220_v18 = vpop.f32.mrb[11].mxu1  ;;  %v1981_v62 = vadd.f32 %v5443_v58, %v7078_v16  ;;  %v2997_v58 = vld [vmem:[%s6807_s26 + $0xc0] sm:$0xff] }
 0x1f9   : > { %v6443_v18 = vpack.c.bf16 %v2633_v15, %v2632_v14  ;;  %v3030_v14 = vld [vmem:[%s6807_s26 + $0x1c8] sm:$0xff] }
 0x29f   : > { %v2057_v19 = vpop.f32.mrb[12].mxu0 }
 0x2a0   : > { %v2133_v20 = vpop.f32.mrb[12].mxu1  ;;  %v6225_v22 = vpop.f32.mrb[13].mxu0  ;;  %v2290_v23 = vsel %vm2289_vm4, %v2057_v19, -inf }
 0x2a1   : > { %v6230_v24 = vpop.f32.mrb[13].mxu1  ;;  %2291 = vmax.xlane.f32.xlu0 %v2290_v23  ;;  %v2293_v25 = vsel %vm2289_vm4, %v2133_v20, -inf }
 0x2a5   : > { %2294 = vmax.xlane.f32.xlu0 %v2293_v25 }
 0x2af   : > { %v2209_v26 = vpop.f32.mrb[14].mxu0 }
 0x2b0   : > { %v2285_v27 = vpop.f32.mrb[14].mxu1  ;;  %v6235_v28 = vpop.f32.mrb[15].mxu0  ;;  %v2296_v29 = vsel %vm2289_vm4, %v2209_v26, -inf }
 0x2b1   : > { %v6240_v30 = vpop.f32.mrb[15].mxu1  ;;  %2297 = vmax.xlane.f32.xlu1 %v2296_v29  ;;  %v2299_v31 = vsel %vm2289_vm4, %v2285_v27, -inf }
 0x2b5   : > { %2300 = vmax.xlane.f32.xlu1 %v2299_v31 }
 0x32e   : > { %v2292_v32 = vpop.xlane.xlu0 %2291 }
 0x32f   : > { %v2302_v33 = vsub.f32 %v2057_v19, %v2292_v32 }
 0x331   : > { %v2306_v34 = vmul.f32 1.442695, %v2302_v33 }
 0x332   : > { %v2295_v35 = vpop.xlane.xlu0 %2294 }
 0x333   : > { %6587 = vpow2.f32 %v2306_v34  ;;  %v2303_v36 = vsub.f32 %v2133_v20, %v2295_v35 }
 0x335   : > { %v2308_v37 = vmul.f32 1.442695, %v2303_v36 }
 0x337   : > { %6589 = vpow2.f32 %v2308_v37  ;;  %v5464_v37 = vld [vmem:[%s7543_s3] ss:$0 sm:$0xff] }
 0x33d   : > { %v6588_v38 = vpop.eup %6587 }
 0x33e   : > { %v2298_v39 = vpop.xlane.xlu1 %2297  ;;  %v2314_v41 = vsel %vm2289_vm4, %v6588_v38, 0.0 }
 0x33f   : > { %v2304_v42 = vsub.f32 %v2209_v26, %v2298_v39  ;;  %2315 = vadd.xlane.f32.xlu0 %v2314_v41 }
 0x341   : > { %v6590_v43 = vpop.eup %6589  ;;  %v2310_v44 = vmul.f32 1.442695, %v2304_v42  ;;  %v6607_v42 = vld [vmem:[#allocation2] sm:$0xff] }
 0x342   : > { %v2301_v45 = vpop.xlane.xlu1 %2300  ;;  %v2317_v46 = vsel %vm2289_vm4, %v6590_v43, 0.0 }
 0x343   : > { %6591 = vpow2.f32 %v2310_v44  ;;  %v2305_v47 = vsub.f32 %v2285_v27, %v2301_v45  ;;  %2318 = vadd.xlane.f32.xlu1 %v2317_v46 }
 0x345   : > { %v2312_v40 = vmul.f32 1.442695, %v2305_v47 }
 0x347   : > { %6593 = vpow2.f32 %v2312_v40 }
 0x34d   : > { %v6592_v48 = vpop.eup %6591 }
 0x34e   : > { %v2320_v49 = vsel %vm2289_vm4, %v6592_v48, 0.0 }
 0x34f   : > { %2321 = vadd.xlane.f32.xlu0 %v2320_v49  ;;  %v2973_v49 = vld [vmem:[%s6807_s26] sm:$0xff] }
 0x351   : > { %v6594_v50 = vpop.eup %6593 }
 0x352   : > { %v2323_v51 = vsel %vm2289_vm4, %v6594_v50, 0.0 }
 0x353   : > { %2324 = vadd.xlane.f32.xlu1 %v2323_v51  ;;  %v2974_v51 = vld [vmem:[%s6807_s26 + $0x8] sm:$0xff] }
 0x3cc   : > { %v2316_v52 = vpop.xlane.xlu0 %2315 }
 0x3cd   : > { %6595 = vrcp.f32 %v2316_v52 }
 0x3d0   : > { %v2319_v53 = vpop.xlane.xlu1 %2318 }
 0x3d1   : > { %6597 = vrcp.f32 %v2319_v53  ;;  %v2982_v53 = vld [vmem:[%s6807_s26 + $0x48] sm:$0xff] }
 0x3d7   : > { %v6596_v55 = vpop.eup %6595 }
 0x3d8   : > { %v2330_v56 = vmul.f32 %v6596_v55, %v6588_v38  ;;  %v5469_v55 = vcombine.low %v2974_v51, %v2982_v53 }
 0x3da   : > { %6244 = vmatmul.mubr.msk.f32.vlgmr.msra.gmra.mrb[16].mxu0 %vm2289_vm4, %v2330_v56  ;;  %v5470_v56 = vcombine.high %v2974_v51, %v2982_v53  ;;  %v3031_v51 = vld [vmem:[%s6807_s26 + $0x1d0] sm:$0xff]  ;;  %v3032_v53 = vld [vmem:[%s6807_s26 + $0x1d8] sm:$0xff] }
 0x3db   : > { %v6598_v59 = vpop.eup %6597  ;;  %6252 = vmatpush3.msra.mxu0 %v1911_v57  ;;  %6253 = vmatprep.mubr.msk.f32.mxu0 %vm6618_vm1, %v6619_v21  ;;  %v2989_v57 = vld [vmem:[%s6807_s26 + $0x80] sm:$0xff] }
 0x3dc   : > { %v2331_v60 = vmul.f32 %v6598_v59, %v6590_v43  ;;  %v2322_v61 = vpop.xlane.xlu0 %2321  ;;  %6433 = vmatprep.subr.bf16.mxu0 %v6617_v13  ;;  %v2990_v59 = vld [vmem:[%s6807_s26 + $0x88] sm:$0xff] }
 0x3dd   : > { %6599 = vrcp.f32 %v2322_v61  ;;  %v2998_v61 = vld [vmem:[%s6807_s26 + $0xc8] sm:$0xff] }
 0x3de   : > { %6249 = vmatmul.mubr.msk.f32.vlgmr.msra.gmra.mrb[16].mxu1 %vm2289_vm4, %v2331_v60  ;;  %v5484_v60 = vcombine.high %v2989_v57, %v2997_v58  ;;  %v5486_v0 = vcombine.high %v2990_v59, %v2998_v61 }
 0x3df   : > { %6257 = vmatpush3.msra.mxu1 %v1981_v62  ;;  %6258 = vmatprep.mubr.msk.f32.mxu1 %vm6618_vm1, %v6619_v21  ;;  %v5483_v62 = vcombine.low %v2989_v57, %v2997_v58  ;;  %v2977_v58 = vld [vmem:[%s6807_s26 + $0x20] sm:$0xff] }
 0x3e0   : > { %v2325_v63 = vpop.xlane.xlu1 %2324  ;;  %6436 = vmatprep.subr.bf16.mxu1 %v6617_v13 }
 0x3e1   : > { %6601 = vrcp.f32 %v2325_v63  ;;  %v5485_v63 = vcombine.low %v2990_v59, %v2998_v61  ;;  %v2985_v59 = vld [vmem:[%s6807_s26 + $0x60] sm:$0xff]  ;;  %v2986_v61 = vld [vmem:[%s6807_s26 + $0x68] sm:$0xff] }
 0x3e7   : > { %v6600_v2 = vpop.eup %6599 }
 0x3e8   : > { %v2332_v4 = vmul.f32 %v6600_v2, %v6592_v48  ;;  %v3013_v2 = vld [vmem:[%s6807_s26 + $0x140] sm:$0xff] }
 0x3ea   : > { %6254 = vmatmul.mubr.msk.f32.vlgmr.msra.gmra.mrb[18].mxu0 %vm2289_vm4, %v2332_v4  ;;  %v5500_v4 = vcombine.high %v3005_v1, %v3013_v2 }
 0x3eb   : > { %v6602_v5 = vpop.eup %6601  ;;  %6435 = vmatpush3.bf16.msra.mxu0 %v6434_v3  ;;  %6265 = vmatprep.mubr.msk.f32.mxu0 %vm6618_vm1, %v6619_v21  ;;  %v3006_v3 = vld [vmem:[%s6807_s26 + $0x108] sm:$0xff] }
 0x3ec   : > { %v2333_v6 = vmul.f32 %v6602_v5, %v6594_v50  ;;  %6439 = vmatprep.subr.bf16.mxu0 %v6617_v13  ;;  %v2981_v50 = vld [vmem:[%s6807_s26 + $0x40] sm:$0xff]  ;;  %v3014_v5 = vld [vmem:[%s6807_s26 + $0x148] sm:$0xff] }
 0x3ed   : > { %v5468_v52 = vcombine.high %v2973_v49, %v2981_v50  ;;  %v5467_v54 = vcombine.low %v2973_v49, %v2981_v50  ;;  %v5501_v7 = vcombine.low %v3006_v3, %v3014_v5  ;;  %v5502_v8 = vcombine.high %v3006_v3, %v3014_v5  ;;  %v3023_v50 = vld [vmem:[%s6807_s26 + $0x190] sm:$0xff]  ;;  %v3001_v3 = vld [vmem:[%s6807_s26 + $0xe0] sm:$0xff]  ;;  %v3002_v5 = vld [vmem:[%s6807_s26 + $0xe8] sm:$0xff] }
 0x3ee   : > { %6259 = vmatmul.mubr.msk.f32.vlgmr.msra.gmra.mrb[18].mxu1 %vm2289_vm4, %v2333_v6  ;;  %v5499_v6 = vcombine.low %v3005_v1, %v3013_v2  ;;  %v2993_v2 = vld [vmem:[%s6807_s26 + $0xa0] sm:$0xff] }
 0x3ef   : > { %6272 = vmatprep.mubr.msk.f32.mxu1 %vm6618_vm1, %v6619_v21  ;;  %6438 = vmatpush3.bf16.msra.mxu1 %v6437_v9  ;;  %v3021_v9 = vld [vmem:[%s6807_s26 + $0x180] sm:$0xff] }
 0x3f0   : > { %6442 = vmatprep.subr.bf16.mxu1 %v6617_v13  ;;  %v5515_v15 = vcombine.low %v3021_v9, %v3029_v10 }
 0x4ad   : > { %v2403_v16 = vpop.f32.mrb[16].mxu0 }
 0x4ae   : > { %v6245_v17 = vpop.f32.mrb[17].mxu0  ;;  %6266 = vmatmul.mubr.msk.f32.vlgmr.msra.gmra.mrb[20].mxu0 %vm1984_vm3, %v2403_v16  ;;  %v5517_v16 = vcombine.low %v3022_v11, %v3030_v14 }
 0x4af   : > { %6441 = vmatpush3.bf16.msra.mxu0 %v6440_v12  ;;  %6279 = vmatprep.mubr.msk.f32.mxu0 %vm6618_vm1, %v6619_v21  ;;  %v5516_v12 = vcombine.high %v3021_v9, %v3029_v10  ;;  %v5518_v17 = vcombine.high %v3022_v11, %v3030_v14  ;;  %v3009_v10 = vld [vmem:[%s6807_s26 + $0x120] sm:$0xff]  ;;  %v3018_v14 = vld [vmem:[%s6807_s26 + $0x168] sm:$0xff] }
 0x4b0   : > { %3444 = vmatprep.subr.bf16.mxu0 %v5468_v52  ;;  %v3024_v52 = vld [vmem:[%s6807_s26 + $0x198] sm:$0xff]  ;;  %v3017_v11 = vld [vmem:[%s6807_s26 + $0x160] sm:$0xff] }
 0x4b1   : > { %v2476_v19 = vpop.f32.mrb[16].mxu1  ;;  %v5522_v57 = vcombine.high %v3024_v52, %v3032_v53 }
 0x4b2   : > { %v6250_v20 = vpop.f32.mrb[17].mxu1  ;;  %6273 = vmatmul.mubr.msk.f32.vlgmr.msra.gmra.mrb[20].mxu1 %vm1984_vm3, %v2476_v19  ;;  %v2983_v19 = vld [vmem:[%s6807_s26 + $0x50] sm:$0xff] }
 0x4b3   : > { %6444 = vmatpush3.bf16.msra.mxu1 %v6443_v18  ;;  %6286 = vmatprep.mubr.msk.f32.mxu1 %vm6618_vm1, %v6619_v21  ;;  %v2975_v18 = vld [vmem:[%s6807_s26 + $0x10] sm:$0xff]  ;;  %v2976_v20 = vld [vmem:[%s6807_s26 + $0x18] sm:$0xff] }
 0x4b4   : > { %3485 = vmatprep.subr.bf16.mxu1 %v5470_v56  ;;  %v5520_v56 = vcombine.high %v3023_v50, %v3031_v51 }
 0x4bd   : > { %v2549_v13 = vpop.f32.mrb[18].mxu0 }
 0x4be   : > { %v6255_v22 = vpop.f32.mrb[19].mxu0  ;;  %6280 = vmatmul.mubr.msk.f32.vlgmr.msra.gmra.mrb[22].mxu0 %vm1984_vm3, %v2549_v13  ;;  %v5471_v13 = vcombine.low %v2975_v18, %v2983_v19 }
 0x4bf   : > { %3445 = vmatpush1.bf16.msra.mxu0 %v5467_v54  ;;  %v5472_v22 = vcombine.high %v2975_v18, %v2983_v19  ;;  %v3025_v19 = vld [vmem:[%s6807_s26 + $0x1a0] sm:$0xff] }
 0x4c0   : > { %3446 = vmatprep.subr.bf16.mxu0 %v5484_v60  ;;  %v2978_v60 = vld [vmem:[%s6807_s26 + $0x28] sm:$0xff] }
 0x4c1   : > { %v2622_v23 = vpop.f32.mrb[18].mxu1  ;;  %v5478_v1 = vcombine.high %v2978_v60, %v2986_v61 }
 0x4c2   : > { %v6260_v24 = vpop.f32.mrb[19].mxu1  ;;  %6287 = vmatmul.mubr.msk.f32.vlgmr.msra.gmra.mrb[22].mxu1 %vm1984_vm3, %v2622_v23  ;;  %v2984_v23 = vld [vmem:[%s6807_s26 + $0x58] sm:$0xff] }
 0x4c3   : > { %3486 = vmatpush1.bf16.msra.mxu1 %v5469_v55  ;;  %3447 = vmatpush1.bf16.msra.mxu0 %v5483_v62  ;;  %v6620_v24 = vmov 0   ;;  %v5519_v62 = vcombine.low %v3023_v50, %v3031_v51 }
 0x4c4   : > { %3487 = vmatprep.subr.bf16.mxu1 %v5486_v0  ;;  %3448 = vmatprep.subr.bf16.mxu0 %v5500_v4  ;;  %v5476_v0 = vcombine.high %v2977_v58, %v2985_v59  ;;  %v2994_v4 = vld [vmem:[%s6807_s26 + $0xa8] sm:$0xff] }
 0x4c5   : > { %3476 = vmatprep.mubr.bf16.mxu0 %v6620_v24  ;;  %3517 = vmatprep.mubr.bf16.mxu1 %v6620_v24  ;;  %v5494_v9 = vcombine.high %v2994_v4, %v3002_v5 }
 0x4c7   : > { %3488 = vmatpush1.bf16.msra.mxu1 %v5485_v63  ;;  %3449 = vmatpush1.bf16.msra.mxu0 %v5499_v6  ;;  %v5521_v63 = vcombine.low %v3024_v52, %v3032_v53  ;;  %v5475_v6 = vcombine.low %v2977_v58, %v2985_v59  ;;  %v3027_v53 = vld [vmem:[%s6807_s26 + $0x1b0] sm:$0xff] }
 0x4c8   : > { %3489 = vmatprep.subr.bf16.mxu1 %v5502_v8  ;;  %3450 = vmatprep.subr.bf16.mxu0 %v5516_v12  ;;  %v5492_v8 = vcombine.high %v2993_v2, %v3001_v3  ;;  %v3010_v12 = vld [vmem:[%s6807_s26 + $0x128] sm:$0xff] }
 0x4c9   : > { %v5510_v18 = vcombine.high %v3010_v12, %v3018_v14 }
 0x4cb   : > { %3490 = vmatpush1.bf16.msra.mxu1 %v5501_v7  ;;  %3451 = vmatpush1.bf16.msra.mxu0 %v5515_v15  ;;  %v5477_v7 = vcombine.low %v2978_v60, %v2986_v61  ;;  %v5491_v15 = vcombine.low %v2993_v2, %v3001_v3  ;;  %v6463_v2 = vld [vmem:[%s6819_s23 + $0x48] sm:$0xff]  }
 0x4cc   : > { %3491 = vmatprep.subr.bf16.mxu1 %v5518_v17  ;;  %3526 = vmatprep.subr.bf16.mxu0 %v5472_v22  ;;  %v5508_v17 = vcombine.high %v3009_v10, %v3017_v11  ;;  %v3034_v22 = vld [vmem:[%s6807_s26 + $0x1e8] sm:$0xff] }
 0x4cd   : > { %v6464_v3 = vld [vmem:[%s6819_s23 + $0xc8] sm:$0xff]  }
 0x4cf   : > { %3492 = vmatpush1.bf16.msra.mxu1 %v5517_v16  ;;  %v5493_v16 = vcombine.low %v2994_v4, %v3002_v5  ;;  %v6465_v4 = vld [vmem:[%s6819_s23 + $0x8] sm:$0xff]  }
 0x4d0   : > { %v6466_v5 = vld [vmem:[%s6819_s23 + $0x88] sm:$0xff]  }
 0x581   : > { %v2703_v25 = vpop.f32.mrb[20].mxu0 }
 0x582   : > { %v6267_v26 = vpop.f32.mrb[21].mxu0  ;;  %v2926_v28 = vsel %vm1016_vm2, %v2703_v25, 0.0  ;;  %v5473_v25 = vcombine.low %v2976_v20, %v2984_v23 }
 0x583   : > { %v5474_v26 = vcombine.high %v2976_v20, %v2984_v23  ;;  %v3033_v20 = vld [vmem:[%s6807_s26 + $0x1e0] sm:$0xff]  ;;  %v5507_v23 = vcombine.low %v3009_v10, %v3017_v11  ;;  %v6472_v10 = vld [vmem:[%s6819_s23 + $0xd8] sm:$0xff]  }
 0x584   : > { %v6473_v11 = vld [vmem:[%s6819_s23 + $0x18] sm:$0xff]  }
 0x585   : > { %v2776_v27 = vpop.f32.mrb[20].mxu1  ;;  %3567 = vmatprep.subr.bf16.mxu1 %v5474_v26  ;;  %v5524_v26 = vcombine.high %v3025_v19, %v3033_v20 }
 0x586   : > { %v2927_v29 = vsel %vm1016_vm2, %v2776_v27, 0.0  ;;  %v6274_v30 = vpop.f32.mrb[21].mxu1 }
 0x587   : > { %v2928_v31 = vadd.f32 %v2927_v29, %v2926_v28 }
 0x591   : > { %v2849_v32 = vpop.f32.mrb[22].mxu0 }
 0x592   : > { %v2929_v21 = vsel %vm1016_vm2, %v2849_v32, 0.0  ;;  %v6281_v33 = vpop.f32.mrb[23].mxu0 }
 0x593   : > { %v2930_v34 = vadd.f32 %v2929_v21, %v2928_v31  ;;  %v5465_v31 = vld [vmem:[%s7544_s30] ss:$0 sm:$0xff] }
 0x594   : > { %v5466_v21 = vld [vmem:[%s7545_s5] ss:$0 sm:$0xff] }
 0x595   : > { %v2922_v35 = vpop.f32.mrb[22].mxu1 }
 0x596   : > { %v2931_v36 = vsel %vm1016_vm2, %v2922_v35, 0.0  ;;  %v6288_v38 = vpop.f32.mrb[23].mxu1  ;;  %v2999_v35 = vld [vmem:[%s6807_s26 + $0xd0] sm:$0xff] }
 0x597   : > { %v2932_v39 = vadd.f32 %v2931_v36, %v2930_v34  ;;  %v2991_v34 = vld [vmem:[%s6807_s26 + $0x90] sm:$0xff]  ;;  %v2992_v36 = vld [vmem:[%s6807_s26 + $0x98] sm:$0xff] }
 0x599   : > { %v2940_v41 = vadd.f32 %v5464_v37, %v2932_v39  ;;  %v3000_v37 = vld [vmem:[%s6807_s26 + $0xd8] sm:$0xff] }
 0x59b   : > { %v2941_v43 = vadd.f32 %v6607_v42, %v2940_v41  ;;  %v5488_v41 = vcombine.high %v2991_v34, %v2999_v35  ;;  %v5490_v42 = vcombine.high %v2992_v36, %v3000_v37 }
 0x59d   : > { %v2944_v44 = vsel %vm1016_vm2, %v2941_v43, 0.0 }
 0x59e   : > { %2945 = vadd.xlane.f32.xlu0 %v2944_v44  ;;  %v3015_v44 = vld [vmem:[%s6807_s26 + $0x150] sm:$0xff] }
 0x62b   : > { %v2946_v45 = vpop.xlane.xlu0 %2945 }
 0x62c   : > { %v2948_v46 = vmul.f32 0.015625, %v2946_v45  ;;  %v3008_v45 = vld [vmem:[%s6807_s26 + $0x118] sm:$0xff] }
 0x62e   : > { %v7133_v47 = vsub.f32 %v2941_v43, %v2948_v46  ;;  %v3007_v43 = vld [vmem:[%s6807_s26 + $0x110] sm:$0xff]  ;;  %v3016_v46 = vld [vmem:[%s6807_s26 + $0x158] sm:$0xff] }
 0x62f   : > { %v5506_v49 = vcombine.high %v3008_v45, %v3016_v46  ;;  %v5503_v54 = vcombine.low %v3007_v43, %v3015_v44  ;;  %v5505_v55 = vcombine.low %v3008_v45, %v3016_v46  ;;  %v3011_v46 = vld [vmem:[%s6807_s26 + $0x130] sm:$0xff] }
 0x630   : > { %v2950_v40 = vmul.f32 %v7133_v47, %v7133_v47 }
 0x632   : > { %v2951_v48 = vsel %vm1016_vm2, %v2950_v40, 0.0  ;;  %v5489_v40 = vcombine.low %v2992_v36, %v3000_v37  ;;  %v3003_v36 = vld [vmem:[%s6807_s26 + $0xf0] sm:$0xff]  ;;  %v2996_v37 = vld [vmem:[%s6807_s26 + $0xb8] sm:$0xff] }
 0x633   : > { %2952 = vadd.xlane.f32.xlu1 %v2951_v48  ;;  %v5504_v48 = vcombine.high %v3007_v43, %v3015_v44 }
 0x6c0   : > { %v2953_v27 = vpop.xlane.xlu1 %2952 }
 0x6c1   : > { %v2954_v28 = vmul.f32 0.015625, %v2953_v27 }
 0x6c3   : > { %v2955_v29 = vadd.f32 1e-05, %v2954_v28  ;;  %v2979_v28 = vld [vmem:[%s6807_s26 + $0x30] sm:$0xff] }
 0x6c5   : > { %6603 = vrsqrt.f32 %v2955_v29  ;;  %v2987_v29 = vld [vmem:[%s6807_s26 + $0x70] sm:$0xff] }
 0x6cf   : > { %v6604_v30 = vpop.eup %6603 }
 0x6d0   : > { %v2957_v32 = vmul.f32 %v6604_v30, %v7133_v47  ;;  %v5487_v47 = vcombine.low %v2991_v34, %v2999_v35  ;;  %v2980_v30 = vld [vmem:[%s6807_s26 + $0x38] sm:$0xff]  ;;  %v2995_v35 = vld [vmem:[%s6807_s26 + $0xb0] sm:$0xff] }
 0x6d1   : > { %v5496_v44 = vcombine.high %v2995_v35, %v3003_v36 }
 0x6d2   : > { %v2964_v33 = vmul.f32 %v5465_v31, %v2957_v32  ;;  %v2988_v31 = vld [vmem:[%s6807_s26 + $0x78] sm:$0xff]  ;;  %v5523_v32 = vcombine.low %v3025_v19, %v3033_v20  ;;  %v6480_v19 = vld [vmem:[%s6819_s23 + $0xe8] sm:$0xff]  }
 0x6d3   : > { %v5482_v34 = vcombine.high %v2980_v30, %v2988_v31  ;;  %v5481_v43 = vcombine.low %v2980_v30, %v2988_v31  ;;  %v6481_v20 = vld [vmem:[%s6819_s23 + $0x28] sm:$0xff]   ;;  %v6490_v30 = vld [vmem:[%s6819_s23 + $0xb8] sm:$0xff]   ;;  %v6491_v31 = vld [vmem:[%s6819_s23 + $0x140] sm:$0xff]  }
 0x6d4   : > { %v7175_v38 = vadd.f32 %v5466_v21, %v2964_v33  ;;  %v5480_v33 = vcombine.high %v2979_v28, %v2987_v29 }
 0x6d6   : > { %v7179_v39 = vpack.c.bf16 %v7175_v38, %v7175_v38 }
 0x6d8   : > { %5531 = vmatmul.mubr.msk.bf16.vlgmr.msra.gmra.mrb[24].mxu0 %vm1016_vm2, %v7179_v39  ;;  %5532 = vmatmul.mubr.msk.bf16.vlgmr.msra.gmra.mrb[24].mxu1 %vm1016_vm2, %v7179_v39 }
 0x6d9   : > { %3527 = vmatpush1.bf16.msra.mxu0 %v5471_v13  ;;  %3568 = vmatpush1.bf16.msra.mxu1 %v5473_v25  ;;  %v3026_v13 = vld [vmem:[%s6807_s26 + $0x1a8] sm:$0xff]  ;;  %v5509_v25 = vcombine.low %v3010_v12, %v3018_v14  ;;  %v6474_v12 = vld [vmem:[%s6819_s23 + $0x98] sm:$0xff]   ;;  %v6475_v14 = vld [vmem:[%s6819_s23 + $0x60] sm:$0xff]  }
 0x6da   : > { %3528 = vmatprep.subr.bf16.mxu0 %v5488_v41  ;;  %3569 = vmatprep.subr.bf16.mxu1 %v5490_v42  ;;  %v5526_v27 = vcombine.high %v3026_v13, %v3034_v22  ;;  %v5525_v21 = vcombine.low %v3026_v13, %v3034_v22  ;;  %v3004_v41 = vld [vmem:[%s6807_s26 + $0xf8] sm:$0xff]  ;;  %v5479_v42 = vcombine.low %v2979_v28, %v2987_v29  ;;  %v6482_v13 = vld [vmem:[%s6819_s23 + $0xa8] sm:$0xff]   ;;  %v6483_v22 = vld [vmem:[%s6819_s23 + $0x70] sm:$0xff]  }
 0x6db   : > { %3558 = vmatprep.mubr.bf16.mxu0 %v6620_v24  ;;  %3599 = vmatprep.mubr.bf16.mxu1 %v6620_v24  ;;  %v5498_v45 = vcombine.high %v2996_v37, %v3004_v41  ;;  %v5497_v50 = vcombine.low %v2996_v37, %v3004_v41  ;;  %v6488_v28 = vld [vmem:[%s6819_s23 + $0xf8] sm:$0xff]  }
 0x6dc   : > { %v6489_v29 = vld [vmem:[%s6819_s23 + $0x38] sm:$0xff]  }
 0x6dd   : > { %3529 = vmatpush1.bf16.msra.mxu0 %v5487_v47  ;;  %3570 = vmatpush1.bf16.msra.mxu1 %v5489_v40  ;;  %v3019_v47 = vld [vmem:[%s6807_s26 + $0x170] sm:$0xff]  ;;  %v3012_v40 = vld [vmem:[%s6807_s26 + $0x138] sm:$0xff] }
 0x6de   : > { %3530 = vmatprep.subr.bf16.mxu0 %v5504_v48  ;;  %3571 = vmatprep.subr.bf16.mxu1 %v5506_v49  ;;  %v3020_v48 = vld [vmem:[%s6807_s26 + $0x178] sm:$0xff]  ;;  %v5495_v49 = vcombine.low %v2995_v35, %v3003_v36  ;;  %v5512_v51 = vcombine.high %v3011_v46, %v3019_v47  ;;  %v7281_v35 = vld [vmem:[%s6813_s27 + $0x8] sm:$0xff] }
 0x6df   : > { %v5514_v52 = vcombine.high %v3012_v40, %v3020_v48  ;;  %v5513_v58 = vcombine.low %v3012_v40, %v3020_v48 }
 0x6e1   : > { %3531 = vmatpush1.bf16.msra.mxu0 %v5503_v54  ;;  %3572 = vmatpush1.bf16.msra.mxu1 %v5505_v55  ;;  %v3035_v54 = vld [vmem:[%s6807_s26 + $0x1f0] sm:$0xff]  ;;  %v3028_v55 = vld [vmem:[%s6807_s26 + $0x1b8] sm:$0xff] }
 0x6e2   : > { %3532 = vmatprep.subr.bf16.mxu0 %v5520_v56  ;;  %3573 = vmatprep.subr.bf16.mxu1 %v5522_v57  ;;  %v3036_v56 = vld [vmem:[%s6807_s26 + $0x1f8] sm:$0xff]  ;;  %v5511_v57 = vcombine.low %v3011_v46, %v3019_v47  ;;  %v5528_v59 = vcombine.high %v3027_v53, %v3035_v54  ;;  %v5527_v61 = vcombine.low %v3027_v53, %v3035_v54 }
 0x6e3   : > { %v5530_v60 = vcombine.high %v3028_v55, %v3036_v56 }
 0x6e5   : > { %3533 = vmatpush1.bf16.msra.mxu0 %v5519_v62  ;;  %3574 = vmatpush1.bf16.msra.mxu1 %v5521_v63  ;;  %v5529_v62 = vcombine.low %v3028_v55, %v3036_v56  ;;  %v6460_v63 = vld [vmem:[%s6819_s23 + $0xc0] sm:$0xff]  }
 0x6e6   : > { %3608 = vmatprep.subr.bf16.mxu0 %v5476_v0  ;;  %3649 = vmatprep.subr.bf16.mxu1 %v5478_v1  ;;  %v6461_v0 = vld [vmem:[%s6819_s23] sm:$0xff]  }
 0x6e7   : > { %v6462_v1 = vld [vmem:[%s6819_s23 + $0x80] sm:$0xff]  }
 0x6e8   : > { %5533 = vmatmul.mubr.msk.bf16.vlgmr.msra.gmra.mrb[28].mxu0 %vm1016_vm2, %v7179_v39  ;;  %5534 = vmatmul.mubr.msk.bf16.vlgmr.msra.gmra.mrb[28].mxu1 %vm1016_vm2, %v7179_v39 }
 0x6e9   : > { %3609 = vmatpush1.bf16.msra.mxu0 %v5475_v6  ;;  %3650 = vmatpush1.bf16.msra.mxu1 %v5477_v7  ;;  %v6467_v6 = vld [vmem:[%s6819_s23 + $0x50] sm:$0xff]  }
 0x6ea   : > { %3610 = vmatprep.subr.bf16.mxu0 %v5492_v8  ;;  %3651 = vmatprep.subr.bf16.mxu1 %v5494_v9  ;;  %v6468_v7 = vld [vmem:[%s6819_s23 + $0xd0] sm:$0xff]  }
 0x6eb   : > { %3640 = vmatprep.mubr.bf16.mxu0 %v6620_v24  ;;  %3681 = vmatprep.mubr.bf16.mxu1 %v6620_v24  ;;  %v6469_v8 = vld [vmem:[%s6819_s23 + $0x10] sm:$0xff]  }
 0x6ec   : > { %v6470_v9 = vld [vmem:[%s6819_s23 + $0x90] sm:$0xff]  }
 0x6ed   : > { %3611 = vmatpush1.bf16.msra.mxu0 %v5491_v15  ;;  %3652 = vmatpush1.bf16.msra.mxu1 %v5493_v16  ;;  %v6476_v15 = vld [vmem:[%s6819_s23 + $0xe0] sm:$0xff]  }
 0x6ee   : > { %3612 = vmatprep.subr.bf16.mxu0 %v5508_v17  ;;  %3653 = vmatprep.subr.bf16.mxu1 %v5510_v18  ;;  %v6477_v16 = vld [vmem:[%s6819_s23 + $0x20] sm:$0xff]   ;;  %v6479_v18 = vld [vmem:[%s6819_s23 + $0x68] sm:$0xff]  }
 0x6ef   : > { %v6478_v17 = vld [vmem:[%s6819_s23 + $0xa0] sm:$0xff]  }
 0x6f1   : > { %3613 = vmatpush1.bf16.msra.mxu0 %v5507_v23  ;;  %3654 = vmatpush1.bf16.msra.mxu1 %v5509_v25  ;;  %v6484_v23 = vld [vmem:[%s6819_s23 + $0xf0] sm:$0xff]  }
 0x6f2   : > { %3614 = vmatprep.subr.bf16.mxu0 %v5524_v26  ;;  %3655 = vmatprep.subr.bf16.mxu1 %v5526_v27  ;;  %v6485_v25 = vld [vmem:[%s6819_s23 + $0x30] sm:$0xff]   ;;  %v6487_v27 = vld [vmem:[%s6819_s23 + $0x78] sm:$0xff]  }
 0x6f3   : > { %v6486_v26 = vld [vmem:[%s6819_s23 + $0xb0] sm:$0xff]  }
 0x6f5   : > { %3615 = vmatpush1.bf16.msra.mxu0 %v5523_v32  ;;  %3656 = vmatpush1.bf16.msra.mxu1 %v5525_v21  ;;  %v6492_v32 = vld [vmem:[%s6819_s23 + $0x1c0] sm:$0xff]   ;;  %v3041_v21 = vlaneseq }
 0x6f6   : > { %3690 = vmatprep.subr.bf16.mxu0 %v5480_v33  ;;  %3731 = vmatprep.subr.bf16.mxu1 %v5482_v34 }
 0x6f7   : > { %v7277_v33 = vshrl.u32 %v3041_v21, 7  ;;  %v6508_v21 = vld [vmem:[%s6819_s23 + $0x1e0] sm:$0xff]  }
 0x6f8   : > { %5535 = vmatmul.mubr.msk.bf16.vlgmr.msra.gmra.mrb[32].mxu0 %vm1016_vm2, %v7179_v39  ;;  %5536 = vmatmul.mubr.msk.bf16.vlgmr.msra.gmra.mrb[32].mxu1 %vm1016_vm2, %v7179_v39 }
 0x6f9   : > { %3691 = vmatpush1.bf16.msra.mxu0 %v5479_v42  ;;  %3732 = vmatpush1.bf16.msra.mxu1 %v5481_v43  ;;  %v3067_v34 = vsub.s32 6, %v7277_v33  ;;  %v3043_v37 = vsub.s32 0, %v7277_v33  ;;  %v3051_v41 = vsub.s32 2, %v7277_v33  ;;  %v7291_v42 = vld [vmem:[%s6813_s27] sm:$0xff]  ;;  %v3047_v43 = vsub.s32 1, %v7277_v33 }
 0x6fa   : > { %3692 = vmatprep.subr.bf16.mxu0 %v5496_v44  ;;  %3733 = vmatprep.subr.bf16.mxu1 %v5498_v45  ;;  %v3055_v44 = vsub.s32 3, %v7277_v33 }
 0x6fb   : > { %3722 = vmatprep.mubr.bf16.mxu0 %v6620_v24  ;;  %3763 = vmatprep.mubr.bf16.mxu1 %v6620_v24  ;;  %v6459_v24 = vld [vmem:[%s6819_s23 + $0x40] sm:$0xff]   ;;  %v7286_v36 = vrot.slane %v7281_v35, %v3067_v34  ;;  %v3044_v45 = vrot.slane %v7291_v42, %v3043_v37  ;;  %v3052_v46 = vrot.slane %v7291_v42, %v3051_v41 }
 0x6fc   : > { %v3048_v47 = vrot.slane %v7291_v42, %v3047_v43  ;;  %v3056_v40 = vrot.slane %v7291_v42, %v3055_v44 }
 0x6fd   : > { %3693 = vmatpush1.bf16.msra.mxu0 %v5495_v49  ;;  %3734 = vmatpush1.bf16.msra.mxu1 %v5497_v50 }
 0x6fe   : > { %3694 = vmatprep.subr.bf16.mxu0 %v5512_v51  ;;  %3735 = vmatprep.subr.bf16.mxu1 %v5514_v52 }
 0x701   : > { %3695 = vmatpush1.bf16.msra.mxu0 %v5511_v57  ;;  %3736 = vmatpush1.bf16.msra.mxu1 %v5513_v58 }
 0x702   : > { %3696 = vmatprep.subr.bf16.mxu0 %v5528_v59  ;;  %3737 = vmatprep.subr.bf16.mxu1 %v5530_v60 }
 0x705   : > { %3697 = vmatpush1.bf16.msra.mxu0 %v5527_v61  ;;  %3738 = vmatpush1.bf16.msra.mxu1 %v5529_v62 }
 0x706   : > { %5817 = vmatprep.subr.bf16.mxu0 %v6459_v24  ;;  %5839 = vmatprep.subr.bf16.mxu1 %v6460_v63 }
 0x708   : > { %5537 = vmatmul.mubr.msk.bf16.vlgmr.msra.gmra.mrb[36].mxu0 %vm1016_vm2, %v7179_v39  ;;  %5538 = vmatmul.mubr.msk.bf16.vlgmr.msra.gmra.mrb[36].mxu1 %vm1016_vm2, %v7179_v39  ;;  %v6471_v39 = vld [vmem:[%s6819_s23 + $0x58] sm:$0xff]  }
 0x709   : > { %5818 = vmatpush3.bf16.msra.mxu0 %v6461_v0  ;;  %5840 = vmatpush3.bf16.msra.mxu1 %v6462_v1  ;;  %v6493_v1 = vld [vmem:[%s6819_s23 + $0x100] sm:$0xff]  }
 0x70a   : > { %5819 = vmatprep.subr.bf16.mxu0 %v6463_v2  ;;  %5841 = vmatprep.subr.bf16.mxu1 %v6464_v3  ;;  %v6494_v2 = vld [vmem:[%s6819_s23 + $0x180] sm:$0xff]  }
 0x70d   : > { %5820 = vmatpush3.bf16.msra.mxu0 %v6465_v4  ;;  %5842 = vmatpush3.bf16.msra.mxu1 %v6466_v5  ;;  %v6495_v5 = vld [vmem:[%s6819_s23 + $0x148] sm:$0xff]  }
 0x70e   : > { %5821 = vmatprep.subr.bf16.mxu0 %v6467_v6  ;;  %5843 = vmatprep.subr.bf16.mxu1 %v6468_v7  ;;  %v6496_v6 = vld [vmem:[%s6819_s23 + $0x1c8] sm:$0xff]  }
 0x70f   : > { %v6497_v7 = vld [vmem:[%s6819_s23 + $0x108] sm:$0xff]  }
 0x711   : > { %5822 = vmatpush3.bf16.msra.mxu0 %v6469_v8  ;;  %5844 = vmatpush3.bf16.msra.mxu1 %v6470_v9  ;;  %v6498_v8 = vld [vmem:[%s6819_s23 + $0x188] sm:$0xff]   ;;  %v3063_v9 = vsub.s32 5, %v7277_v33 }
 0x712   : > { %5823 = vmatprep.subr.bf16.mxu0 %v6471_v39  ;;  %5845 = vmatprep.subr.bf16.mxu1 %v6472_v10  ;;  %v3071_v39 = vsub.s32 7, %v7277_v33  ;;  %v6499_v10 = vld [vmem:[%s6819_s23 + $0x150] sm:$0xff]  }
 0x715   : > { %5824 = vmatpush3.bf16.msra.mxu0 %v6473_v11  ;;  %5846 = vmatpush3.bf16.msra.mxu1 %v6474_v12  ;;  %v6500_v11 = vld [vmem:[%s6819_s23 + $0x1d0] sm:$0xff]   ;;  %v3064_v12 = vrot.slane %v7291_v42, %v3063_v9 }
 0x716   : > { %5825 = vmatprep.subr.bf16.mxu0 %v6475_v14  ;;  %5847 = vmatprep.subr.bf16.mxu1 %v6476_v15  ;;  %v3072_v14 = vrot.slane %v7291_v42, %v3071_v39  ;;  %v6501_v15 = vld [vmem:[%s6819_s23 + $0x110] sm:$0xff]  }
 0x719   : > { %5826 = vmatpush3.bf16.msra.mxu0 %v6477_v16  ;;  %5848 = vmatpush3.bf16.msra.mxu1 %v6478_v17  ;;  %v6502_v16 = vld [vmem:[%s6819_s23 + $0x190] sm:$0xff]   ;;  %v6503_v17 = vld [vmem:[%s6819_s23 + $0x158] sm:$0xff]  }
 0x71a   : > { %5827 = vmatprep.subr.bf16.mxu0 %v6479_v18  ;;  %5849 = vmatprep.subr.bf16.mxu1 %v6480_v19  ;;  %v6504_v18 = vld [vmem:[%s6819_s23 + $0x1d8] sm:$0xff]  }
 0x71d   : > { %5828 = vmatpush3.bf16.msra.mxu0 %v6481_v20  ;;  %5850 = vmatpush3.bf16.msra.mxu1 %v6482_v13 }
 0x71e   : > { %5829 = vmatprep.subr.bf16.mxu0 %v6483_v22  ;;  %5851 = vmatprep.subr.bf16.mxu1 %v6484_v23 }
 0x721   : > { %5830 = vmatpush3.bf16.msra.mxu0 %v6485_v25  ;;  %5852 = vmatpush3.bf16.msra.mxu1 %v6486_v26 }
 0x722   : > { %5831 = vmatprep.subr.bf16.mxu0 %v6487_v27  ;;  %5853 = vmatprep.subr.bf16.mxu1 %v6488_v28  ;;  %v6505_v28 = vld [vmem:[%s6819_s23 + $0x118] sm:$0xff]  }
 0x725   : > { %5832 = vmatpush3.bf16.msra.mxu0 %v6489_v29  ;;  %5854 = vmatpush3.bf16.msra.mxu1 %v6490_v30  ;;  %v6506_v29 = vld [vmem:[%s6819_s23 + $0x198] sm:$0xff]  }
 0x726   : > { %5861 = vmatprep.subr.bf16.mxu0 %v6491_v31  ;;  %5883 = vmatprep.subr.bf16.mxu1 %v6492_v32  ;;  %v6507_v32 = vld [vmem:[%s6819_s23 + $0x160] sm:$0xff]  }
 0x7ab   : > { %v3478_v48 = vpop.f32.mrb[24].mxu0  ;;  %v3519_v49 = vpop.f32.mrb[24].mxu1 }
 0x7ac   : > { %v3479_v50 = vadd.f32 %v3478_v48, %v3044_v45  ;;  %v3520_v51 = vadd.f32 %v3519_v49, %v3052_v46  ;;  %v3480_v52 = vpop.f32.mrb[25].mxu0  ;;  %v3521_v53 = vpop.f32.mrb[25].mxu1  ;;  %v6509_v48 = vld [vmem:[%s6819_s23 + $0x120] sm:$0xff]  }
 0x7ad   : > { %v3481_v54 = vadd.f32 %v3480_v52, %v3048_v47  ;;  %v3522_v55 = vadd.f32 %v3521_v53, %v3056_v40  ;;  %v3482_v56 = vpop.f32.mrb[26].mxu0  ;;  %v3523_v57 = vpop.f32.mrb[26].mxu1  ;;  %v6510_v49 = vld [vmem:[%s6819_s23 + $0x1a0] sm:$0xff]   ;;  %v6512_v52 = vld [vmem:[%s6819_s23 + $0x1e8] sm:$0xff]  }
 0x7ae   : > { %v3772_v58 = vmax.f32 %v3479_v50, 0.0  ;;  %v3774_v59 = vmax.f32 %v3520_v51, 0.0  ;;  %v3483_v60 = vpop.f32.mrb[27].mxu0  ;;  %v3524_v61 = vpop.f32.mrb[27].mxu1  ;;  %v3059_v50 = vsub.s32 4, %v7277_v33  ;;  %v6511_v51 = vld [vmem:[%s6819_s23 + $0x168] sm:$0xff]   ;;  %v3068_v56 = vrot.slane %v7291_v42, %v3067_v34 }
 0x7af   : > { %v3773_v62 = vmax.f32 %v3481_v54, 0.0  ;;  %v3775_v24 = vmax.f32 %v3522_v55, 0.0  ;;  %v6513_v53 = vld [vmem:[%s6819_s23 + $0x128] sm:$0xff]   ;;  %v6515_v57 = vld [vmem:[%s6819_s23 + $0x170] sm:$0xff]   ;;  %v3084_v60 = vrot.slane %v7281_v35, %v3051_v41  ;;  %v3080_v34 = vrot.slane %v7281_v35, %v3047_v43  ;;  %v6520_v41 = vld [vmem:[%s6819_s23 + $0x1f8] sm:$0xff]  }
 0x7b0   : > { %v3788_v3 = vpack.c.bf16 %v3772_v58, %v3772_v58  ;;  %v3790_v4 = vpack.c.bf16 %v3774_v59, %v3774_v59  ;;  %v6514_v54 = vld [vmem:[%s6819_s23 + $0x1a8] sm:$0xff]   ;;  %v3060_v55 = vrot.slane %v7291_v42, %v3059_v50  ;;  %v6516_v58 = vld [vmem:[%s6819_s23 + $0x1f0] sm:$0xff]   ;;  %v3076_v59 = vrot.slane %v7281_v35, %v3043_v37  ;;  %v6519_v37 = vld [vmem:[%s6819_s23 + $0x178] sm:$0xff]  }
 0x7b1   : > { %v3789_v63 = vpack.c.bf16 %v3773_v62, %v3773_v62  ;;  %v3791_v0 = vpack.c.bf16 %v3775_v24, %v3775_v24  ;;  %v3088_v42 = vrot.slane %v7281_v35, %v3055_v44  ;;  %v6517_v61 = vld [vmem:[%s6819_s23 + $0x130] sm:$0xff]  }
 0x7b2   : > { %v6518_v62 = vld [vmem:[%s6819_s23 + $0x1b0] sm:$0xff]  }
 0x7b3   : > { %4867 = vmatprep.mubr.bf16.mxu0 %v3789_v63  ;;  %4907 = vmatprep.mubr.bf16.mxu1 %v3791_v0 }
 0x7b4   : > { %4868 = vmatmul.mubr.bf16.vlgmr.msra.gmra.mrb[40].mxu0 %v3788_v3  ;;  %4908 = vmatmul.mubr.bf16.vlgmr.msra.gmra.mrb[40].mxu1 %v3790_v4 }
 0x7b5   : > { %5862 = vmatpush3.bf16.msra.mxu0 %v6493_v1  ;;  %5884 = vmatpush3.bf16.msra.mxu1 %v6494_v2 }
 0x7b6   : > { %5863 = vmatprep.subr.bf16.mxu0 %v6495_v5  ;;  %5885 = vmatprep.subr.bf16.mxu1 %v6496_v6 }
 0x7b9   : > { %5864 = vmatpush3.bf16.msra.mxu0 %v6497_v7  ;;  %5886 = vmatpush3.bf16.msra.mxu1 %v6498_v8  ;;  %v6521_v8 = vld [vmem:[%s6819_s23 + $0x138] sm:$0xff]  }
 0x7ba   : > { %5865 = vmatprep.subr.bf16.mxu0 %v6499_v10  ;;  %5887 = vmatprep.subr.bf16.mxu1 %v6500_v11  ;;  %v6522_v10 = vld [vmem:[%s6819_s23 + $0x1b8] sm:$0xff]  }
 0x7bb   : > { %v3560_v19 = vpop.f32.mrb[28].mxu0  ;;  %v3601_v20 = vpop.f32.mrb[28].mxu1 }
 0x7bc   : > { %v3562_v13 = vpop.f32.mrb[29].mxu0  ;;  %v3603_v22 = vpop.f32.mrb[29].mxu1  ;;  %v3561_v24 = vadd.f32 %v3560_v19, %v3060_v55  ;;  %v3602_v63 = vadd.f32 %v3601_v20, %v3068_v56  ;;  %v6525_v20 = vld [vmem:[%s6819_s23 + $0x200] sm:$0xff]   ;;  %v6537_v56 = vld [vmem:[%s6819_s23 + $0x218] sm:$0xff]  }
 0x7bd   : > { %v3563_v23 = vadd.f32 %v3562_v13, %v3064_v12  ;;  %v3604_v25 = vadd.f32 %v3603_v22, %v3072_v14  ;;  %v3564_v26 = vpop.f32.mrb[30].mxu0  ;;  %v3605_v27 = vpop.f32.mrb[30].mxu1  ;;  %5866 = vmatpush3.bf16.msra.mxu0 %v6501_v15  ;;  %5888 = vmatpush3.bf16.msra.mxu1 %v6502_v16  ;;  %v6523_v16 = vld [vmem:[%s6819_s23 + $0x240] sm:$0xff]  }
 0x7be   : > { %v3565_v30 = vpop.f32.mrb[31].mxu0  ;;  %v3606_v31 = vpop.f32.mrb[31].mxu1  ;;  %5867 = vmatprep.subr.bf16.mxu0 %v6503_v17  ;;  %5889 = vmatprep.subr.bf16.mxu1 %v6504_v18  ;;  %v3776_v11 = vmax.f32 %v3561_v24, 0.0  ;;  %v3778_v12 = vmax.f32 %v3602_v63, 0.0  ;;  %v6524_v17 = vld [vmem:[%s6819_s23 + $0x2c0] sm:$0xff]   ;;  %v6527_v26 = vld [vmem:[%s6819_s23 + $0x248] sm:$0xff]  }
 0x7bf   : > { %v3777_v45 = vmax.f32 %v3563_v23, 0.0  ;;  %v3779_v46 = vmax.f32 %v3604_v25, 0.0  ;;  %v6526_v23 = vld [vmem:[%s6819_s23 + $0x280] sm:$0xff]   ;;  %v6528_v27 = vld [vmem:[%s6819_s23 + $0x2c8] sm:$0xff]   ;;  %v6531_v31 = vld [vmem:[%s6819_s23 + $0x250] sm:$0xff]  }
 0x7c0   : > { %v3792_v13 = vpack.c.bf16 %v3776_v11, %v3776_v11  ;;  %v3794_v22 = vpack.c.bf16 %v3778_v12, %v3778_v12  ;;  %v6530_v30 = vld [vmem:[%s6819_s23 + $0x288] sm:$0xff]  }
 0x7c1   : > { %v3793_v47 = vpack.c.bf16 %v3777_v45, %v3777_v45  ;;  %v3795_v40 = vpack.c.bf16 %v3779_v46, %v3779_v46  ;;  %5868 = vmatpush3.bf16.msra.mxu0 %v6505_v28  ;;  %5890 = vmatpush3.bf16.msra.mxu1 %v6506_v29  ;;  %v6529_v29 = vld [vmem:[%s6819_s23 + $0x208] sm:$0xff]   ;;  %v6533_v45 = vld [vmem:[%s6819_s23 + $0x210] sm:$0xff]  }
 0x7c2   : > { %5869 = vmatprep.subr.bf16.mxu0 %v6507_v32  ;;  %5891 = vmatprep.subr.bf16.mxu1 %v6508_v21  ;;  %v6532_v32 = vld [vmem:[%s6819_s23 + $0x2d0] sm:$0xff]   ;;  %v3092_v21 = vrot.slane %v7281_v35, %v3059_v50  ;;  %v6545_v24 = vld [vmem:[%s6819_s23 + $0x228] sm:$0xff]  }
 0x7c3   : > { %4947 = vmatprep.mubr.bf16.mxu0 %v3793_v47  ;;  %4987 = vmatprep.mubr.bf16.mxu1 %v3795_v40  ;;  %v6534_v46 = vld [vmem:[%s6819_s23 + $0x290] sm:$0xff]   ;;  %v6535_v47 = vld [vmem:[%s6819_s23 + $0x258] sm:$0xff]   ;;  %v6546_v63 = vld [vmem:[%s6819_s23 + $0x2a8] sm:$0xff]  }
 0x7c5   : > { %5870 = vmatpush3.bf16.msra.mxu0 %v6509_v48  ;;  %5892 = vmatpush3.bf16.msra.mxu1 %v6510_v49  ;;  %v6536_v49 = vld [vmem:[%s6819_s23 + $0x2d8] sm:$0xff]  }
 0x7c6   : > { %5871 = vmatprep.subr.bf16.mxu0 %v6511_v51  ;;  %5893 = vmatprep.subr.bf16.mxu1 %v6512_v52 }
 0x7c9   : > { %5872 = vmatpush3.bf16.msra.mxu0 %v6513_v53  ;;  %5894 = vmatpush3.bf16.msra.mxu1 %v6514_v54 }
 0x7ca   : > { %5873 = vmatprep.subr.bf16.mxu0 %v6515_v57  ;;  %5895 = vmatprep.subr.bf16.mxu1 %v6516_v58 }
 0x7cb   : > { %v3642_v0 = vpop.f32.mrb[32].mxu0  ;;  %v3683_v1 = vpop.f32.mrb[32].mxu1 }
 0x7cc   : > { %v7362_v2 = vadd.f32 %v3642_v0, %v3076_v59  ;;  %v7364_v3 = vadd.f32 %v3683_v1, %v3084_v60  ;;  %v3644_v43 = vpop.f32.mrb[33].mxu0  ;;  %v3685_v4 = vpop.f32.mrb[33].mxu1  ;;  %v6538_v59 = vld [vmem:[%s6819_s23 + $0x298] sm:$0xff]   ;;  %v6539_v60 = vld [vmem:[%s6819_s23 + $0x260] sm:$0xff]   ;;  %v3096_v0 = vrot.slane %v7281_v35, %v3063_v9  ;;  %v3104_v1 = vrot.slane %v7281_v35, %v3071_v39 }
 0x7cd   : > { %v3645_v44 = vadd.f32 %v3644_v43, %v3080_v34  ;;  %v3686_v5 = vadd.f32 %v3685_v4, %v3088_v42  ;;  %v3646_v6 = vpop.f32.mrb[34].mxu0  ;;  %v3687_v7 = vpop.f32.mrb[34].mxu1  ;;  %5874 = vmatpush3.bf16.msra.mxu0 %v6517_v61  ;;  %5896 = vmatpush3.bf16.msra.mxu1 %v6518_v62  ;;  %v6541_v34 = vld [vmem:[%s6819_s23 + $0x220] sm:$0xff]   ;;  %v6543_v61 = vld [vmem:[%s6819_s23 + $0x268] sm:$0xff]   ;;  %v6549_v43 = vld [vmem:[%s6819_s23 + $0x230] sm:$0xff]  }
 0x7ce   : > { %v3647_v14 = vpop.f32.mrb[35].mxu0  ;;  %v3688_v15 = vpop.f32.mrb[35].mxu1  ;;  %5875 = vmatprep.subr.bf16.mxu0 %v6519_v37  ;;  %5897 = vmatprep.subr.bf16.mxu1 %v6520_v41  ;;  %v6542_v42 = vld [vmem:[%s6819_s23 + $0x2a0] sm:$0xff]   ;;  %v6544_v62 = vld [vmem:[%s6819_s23 + $0x2e8] sm:$0xff]   ;;  %v6547_v37 = vld [vmem:[%s6819_s23 + $0x270] sm:$0xff]   ;;  %v3780_v33 = vmax.f32 %v7362_v2, 0.0 }
 0x7cf   : > { %v3781_v18 = vmax.f32 %v3645_v44, 0.0  ;;  %v3783_v19 = vmax.f32 %v3686_v5, 0.0  ;;  %v6548_v41 = vld [vmem:[%s6819_s23 + $0x2f0] sm:$0xff]   ;;  %v6551_v44 = vld [vmem:[%s6819_s23 + $0x278] sm:$0xff]   ;;  %v6555_v39 = vld [vmem:[%s6819_s23 + $0x340] sm:$0xff]  }
 0x7d0   : > { %v6550_v4 = vld [vmem:[%s6819_s23 + $0x2b0] sm:$0xff]   ;;  %v6552_v5 = vld [vmem:[%s6819_s23 + $0x2f8] sm:$0xff]   ;;  %v6557_v14 = vld [vmem:[%s6819_s23 + $0x300] sm:$0xff]   ;;  %v3796_v15 = vpack.c.bf16 %v3780_v33, %v3780_v33 }
 0x7d1   : > { %5876 = vmatpush3.bf16.msra.mxu0 %v6521_v8  ;;  %5898 = vmatpush3.bf16.msra.mxu1 %v6522_v10  ;;  %v3797_v25 = vpack.c.bf16 %v3781_v18, %v3781_v18  ;;  %v3799_v28 = vpack.c.bf16 %v3783_v19, %v3783_v19  ;;  %v6553_v9 = vld [vmem:[%s6819_s23 + $0x238] sm:$0xff]   ;;  %v3782_v8 = vmax.f32 %v7364_v3, 0.0  ;;  %v6556_v10 = vld [vmem:[%s6819_s23 + $0x3c0] sm:$0xff]   ;;  %v6560_v3 = vld [vmem:[%s6819_s23 + $0x3c8] sm:$0xff]  }
 0x7d2   : > { %5905 = vmatprep.subr.bf16.mxu0 %v6523_v16  ;;  %5927 = vmatprep.subr.bf16.mxu1 %v6524_v17  ;;  %v6554_v35 = vld [vmem:[%s6819_s23 + $0x2b8] sm:$0xff]   ;;  %v6558_v2 = vld [vmem:[%s6819_s23 + $0x380] sm:$0xff]   ;;  %v6559_v17 = vld [vmem:[%s6819_s23 + $0x348] sm:$0xff]  }
 0x7d3   : > { %v3798_v16 = vpack.c.bf16 %v3782_v8, %v3782_v8 }
 0x7d4   : > { %4948 = vmatmul.mubr.bf16.vlgmr.msra.gmra.mrb[44].mxu0 %v3792_v13  ;;  %4988 = vmatmul.mubr.bf16.vlgmr.msra.gmra.mrb[44].mxu1 %v3794_v22  ;;  %v6562_v13 = vld [vmem:[%s6819_s23 + $0x388] sm:$0xff]   ;;  %v6563_v22 = vld [vmem:[%s6819_s23 + $0x350] sm:$0xff]  }
 0x7d5   : > { %5906 = vmatpush3.bf16.msra.mxu0 %v6525_v20  ;;  %5027 = vmatprep.mubr.bf16.mxu0 %v3797_v25  ;;  %v6561_v20 = vld [vmem:[%s6819_s23 + $0x308] sm:$0xff]   ;;  %v6565_v25 = vld [vmem:[%s6819_s23 + $0x310] sm:$0xff]  }
 0x7d6   : > { %5928 = vmatpush3.bf16.msra.mxu1 %v6526_v23  ;;  %5067 = vmatprep.mubr.bf16.mxu1 %v3799_v28  ;;  %v6564_v23 = vld [vmem:[%s6819_s23 + $0x3d0] sm:$0xff]   ;;  %v6568_v28 = vld [vmem:[%s6819_s23 + $0x3d8] sm:$0xff]  }
 0x7d7   : > { %5907 = vmatprep.subr.bf16.mxu0 %v6527_v26  ;;  %5929 = vmatprep.subr.bf16.mxu1 %v6528_v27  ;;  %v6566_v26 = vld [vmem:[%s6819_s23 + $0x390] sm:$0xff]   ;;  %v6567_v27 = vld [vmem:[%s6819_s23 + $0x358] sm:$0xff]  }
 0x7d9   : > { %5908 = vmatpush3.bf16.msra.mxu0 %v6529_v29  ;;  %v6569_v29 = vld [vmem:[%s6819_s23 + $0x318] sm:$0xff]  }
 0x7da   : > { %5930 = vmatpush3.bf16.msra.mxu1 %v6530_v30  ;;  %5909 = vmatprep.subr.bf16.mxu0 %v6531_v31  ;;  %v6570_v30 = vld [vmem:[%s6819_s23 + $0x398] sm:$0xff]   ;;  %v6571_v31 = vld [vmem:[%s6819_s23 + $0x360] sm:$0xff]  }
 0x7db   : > { %v3724_v40 = vpop.f32.mrb[36].mxu0  ;;  %v3765_v48 = vpop.f32.mrb[36].mxu1  ;;  %5931 = vmatprep.subr.bf16.mxu1 %v6532_v32  ;;  %v6572_v32 = vld [vmem:[%s6819_s23 + $0x3e0] sm:$0xff]  }
 0x7dc   : > { %v7385_v51 = vadd.f32 %v3724_v40, %v3092_v21  ;;  %v7388_v52 = vadd.f32 %v3765_v48, %v7286_v36  ;;  %v3726_v50 = vpop.f32.mrb[37].mxu0  ;;  %v3767_v53 = vpop.f32.mrb[37].mxu1  ;;  %v6540_v36 = vld [vmem:[%s6819_s23 + $0x2e0] sm:$0xff]   ;;  %v6577_v40 = vld [vmem:[%s6819_s23 + $0x328] sm:$0xff]  }
 0x7dd   : > { %v3728_v54 = vpop.f32.mrb[38].mxu0  ;;  %v3769_v55 = vpop.f32.mrb[38].mxu1  ;;  %5910 = vmatpush3.bf16.msra.mxu0 %v6533_v45  ;;  %v3727_v6 = vadd.f32 %v3726_v50, %v3096_v0  ;;  %v3768_v7 = vadd.f32 %v3767_v53, %v3104_v1  ;;  %v6573_v21 = vld [vmem:[%s6819_s23 + $0x320] sm:$0xff]   ;;  %v6578_v48 = vld [vmem:[%s6819_s23 + $0x3a8] sm:$0xff]   ;;  %v6580_v50 = vld [vmem:[%s6819_s23 + $0x3f0] sm:$0xff]  }
 0x7de   : > { %5932 = vmatpush3.bf16.msra.mxu1 %v6534_v46  ;;  %v3729_v57 = vpop.f32.mrb[39].mxu0  ;;  %v3770_v58 = vpop.f32.mrb[39].mxu1  ;;  %5911 = vmatprep.subr.bf16.mxu0 %v6535_v47  ;;  %v6574_v45 = vld [vmem:[%s6819_s23 + $0x3a0] sm:$0xff]   ;;  %v6575_v46 = vld [vmem:[%s6819_s23 + $0x368] sm:$0xff]   ;;  %v6581_v53 = vld [vmem:[%s6819_s23 + $0x330] sm:$0xff]  }
 0x7df   : > { %5933 = vmatprep.subr.bf16.mxu1 %v6536_v49  ;;  %v3785_v11 = vmax.f32 %v3727_v6, 0.0  ;;  %v3787_v12 = vmax.f32 %v3768_v7, 0.0  ;;  %v6576_v47 = vld [vmem:[%s6819_s23 + $0x3e8] sm:$0xff]   ;;  %v6579_v49 = vld [vmem:[%s6819_s23 + $0x370] sm:$0xff]   ;;  %v6583_v55 = vld [vmem:[%s6819_s23 + $0x378] sm:$0xff]   ;;  %v3784_v58 = vmax.f32 %v7385_v51, 0.0 }
 0x7e0   : > { %v6582_v54 = vld [vmem:[%s6819_s23 + $0x3b0] sm:$0xff]   ;;  %v6585_v57 = vld [vmem:[%s6819_s23 + $0x338] sm:$0xff]  }
 0x7e1   : > { %5912 = vmatpush3.bf16.msra.mxu0 %v6537_v56  ;;  %v3801_v18 = vpack.c.bf16 %v3785_v11, %v3785_v11  ;;  %v3803_v19 = vpack.c.bf16 %v3787_v12, %v3787_v12  ;;  %v6584_v56 = vld [vmem:[%s6819_s23 + $0x3f8] sm:$0xff]  }
 0x7e2   : > { %5934 = vmatpush3.bf16.msra.mxu1 %v6538_v59  ;;  %5913 = vmatprep.subr.bf16.mxu0 %v6539_v60  ;;  %v6586_v59 = vld [vmem:[%s6819_s23 + $0x3b8] sm:$0xff]   ;;  %v3786_v60 = vmax.f32 %v7388_v52, 0.0 }
 0x7e3   : > { %5935 = vmatprep.subr.bf16.mxu1 %v6540_v36  ;;  %v3800_v36 = vpack.c.bf16 %v3784_v58, %v3784_v58 }
 0x7e5   : > { %5914 = vmatpush3.bf16.msra.mxu0 %v6541_v34  ;;  %v3802_v34 = vpack.c.bf16 %v3786_v60, %v3786_v60 }
 0x7e6   : > { %5936 = vmatpush3.bf16.msra.mxu1 %v6542_v42  ;;  %5915 = vmatprep.subr.bf16.mxu0 %v6543_v61 }
 0x7e7   : > { %5937 = vmatprep.subr.bf16.mxu1 %v6544_v62  ;;  %v5539_v62 = vld [vmem:[%s916_s6] ss:$0 sm:$0xff] }
 0x7e9   : > { %5916 = vmatpush3.bf16.msra.mxu0 %v6545_v24 }
 0x7ea   : > { %5938 = vmatpush3.bf16.msra.mxu1 %v6546_v63  ;;  %5917 = vmatprep.subr.bf16.mxu0 %v6547_v37 }
 0x7eb   : > { %5939 = vmatprep.subr.bf16.mxu1 %v6548_v41 }
 0x7ed   : > { %5918 = vmatpush3.bf16.msra.mxu0 %v6549_v43 }
 0x7ee   : > { %5940 = vmatpush3.bf16.msra.mxu1 %v6550_v4  ;;  %5919 = vmatprep.subr.bf16.mxu0 %v6551_v44 }
 0x7ef   : > { %5941 = vmatprep.subr.bf16.mxu1 %v6552_v5 }
 0x7f1   : > { %5920 = vmatpush3.bf16.msra.mxu0 %v6553_v9 }
 0x7f2   : > { %5942 = vmatpush3.bf16.msra.mxu1 %v6554_v35  ;;  %5949 = vmatprep.subr.bf16.mxu0 %v6555_v39 }
 0x7f3   : > { %5971 = vmatprep.subr.bf16.mxu1 %v6556_v10 }
 0x7f4   : > { %5028 = vmatmul.mubr.bf16.vlgmr.msra.gmra.mrb[48].mxu0 %v3796_v15 }
 0x7f5   : > { %5068 = vmatmul.mubr.bf16.vlgmr.msra.gmra.mrb[48].mxu1 %v3798_v16  ;;  %5950 = vmatpush3.bf16.msra.mxu0 %v6557_v14 }
 0x7f6   : > { %5107 = vmatprep.mubr.bf16.mxu0 %v3801_v18  ;;  %5972 = vmatpush3.bf16.msra.mxu1 %v6558_v2 }
 0x7f7   : > { %5147 = vmatprep.mubr.bf16.mxu1 %v3803_v19  ;;  %5951 = vmatprep.subr.bf16.mxu0 %v6559_v17 }
 0x7f8   : > { %5973 = vmatprep.subr.bf16.mxu1 %v6560_v3 }
 0x7f9   : > { %5952 = vmatpush3.bf16.msra.mxu0 %v6561_v20 }
 0x7fa   : > { %5974 = vmatpush3.bf16.msra.mxu1 %v6562_v13  ;;  %5953 = vmatprep.subr.bf16.mxu0 %v6563_v22 }
 0x7fb   : > { %5975 = vmatprep.subr.bf16.mxu1 %v6564_v23 }
 0x7fd   : > { %5954 = vmatpush3.bf16.msra.mxu0 %v6565_v25 }
 0x7fe   : > { %5976 = vmatpush3.bf16.msra.mxu1 %v6566_v26  ;;  %5955 = vmatprep.subr.bf16.mxu0 %v6567_v27 }
 0x7ff   : > { %5977 = vmatprep.subr.bf16.mxu1 %v6568_v28 }
 0x801   : > { %5956 = vmatpush3.bf16.msra.mxu0 %v6569_v29 }
 0x802   : > { %5978 = vmatpush3.bf16.msra.mxu1 %v6570_v30  ;;  %5957 = vmatprep.subr.bf16.mxu0 %v6571_v31 }
 0x803   : > { %5979 = vmatprep.subr.bf16.mxu1 %v6572_v32 }
 0x805   : > { %5958 = vmatpush3.bf16.msra.mxu0 %v6573_v21 }
 0x806   : > { %5980 = vmatpush3.bf16.msra.mxu1 %v6574_v45  ;;  %5959 = vmatprep.subr.bf16.mxu0 %v6575_v46 }
 0x807   : > { %5981 = vmatprep.subr.bf16.mxu1 %v6576_v47 }
 0x809   : > { %5960 = vmatpush3.bf16.msra.mxu0 %v6577_v40 }
 0x80a   : > { %5982 = vmatpush3.bf16.msra.mxu1 %v6578_v48  ;;  %5961 = vmatprep.subr.bf16.mxu0 %v6579_v49 }
 0x80b   : > { %5983 = vmatprep.subr.bf16.mxu1 %v6580_v50 }
 0x80d   : > { %5962 = vmatpush3.bf16.msra.mxu0 %v6581_v53 }
 0x80e   : > { %5984 = vmatpush3.bf16.msra.mxu1 %v6582_v54  ;;  %5963 = vmatprep.subr.bf16.mxu0 %v6583_v55 }
 0x80f   : > { %5985 = vmatprep.subr.bf16.mxu1 %v6584_v56 }
 0x811   : > { %5964 = vmatpush3.bf16.msra.mxu0 %v6585_v57 }
 0x812   : > { %5986 = vmatpush3.bf16.msra.mxu1 %v6586_v59 }
 0x814   : > { %5108 = vmatmul.mubr.bf16.vlgmr.msra.gmra.mrb[52].mxu0 %v3800_v36  ;;  %v5669_v36 = vld [vmem:[%s922_s28] ss:$0 sm:$0xff]  ;;  %s7548_s28 = sld [smem:[#allocation22_spill]] (!%p5670_p5) }
 0x815   : > { %5148 = vmatmul.mubr.bf16.vlgmr.msra.gmra.mrb[52].mxu1 %v3802_v34 }
 0x887   : > { %v5833_v42 = vpop.f32.mrb[40].mxu0  ;;  %v5855_v61 = vpop.f32.mrb[40].mxu1 }
 0x888   : > { %v5834_v51 = vpop.f32.mrb[41].mxu0  ;;  %v5856_v24 = vpop.f32.mrb[41].mxu1 }
 0x889   : > { %v5835_v63 = vadd.f32 %v5834_v51, %v5833_v42  ;;  %v5857_v37 = vadd.f32 %v5856_v24, %v5855_v61  ;;  %v5836_v41 = vpop.f32.mrb[42].mxu0  ;;  %v5858_v52 = vpop.f32.mrb[42].mxu1  ;;  %v5671_v61 = vld [vmem:[%s7547_s24] ss:$0 sm:$0xff] (!%p5670_p5)  ;;  %v5672_v24 = vld [vmem:[#allocation3] ss:$0 sm:$0xff] (!%p5670_p5) }
 0x88a   : > { %v5837_v0 = vpop.f32.mrb[43].mxu0  ;;  %v5859_v1 = vpop.f32.mrb[43].mxu1 }
 0x88b   : > { %v4870_v43 = vadd.f32 %v5835_v63, %v5539_v62 }
 0x88d   : > { %v4910_v4 = vadd.f32 %v5857_v37, %v4870_v43 }
 0x8a7   : > { %v5877_v44 = vpop.f32.mrb[44].mxu0  ;;  %v5899_v5 = vpop.f32.mrb[44].mxu1 }
 0x8a8   : > { %v5878_v6 = vpop.f32.mrb[45].mxu0  ;;  %v5900_v7 = vpop.f32.mrb[45].mxu1 }
 0x8a9   : > { %v5879_v9 = vadd.f32 %v5878_v6, %v5877_v44  ;;  %v5901_v33 = vadd.f32 %v5900_v7, %v5899_v5  ;;  %v5880_v35 = vpop.f32.mrb[46].mxu0  ;;  %v5902_v39 = vpop.f32.mrb[46].mxu1 }
 0x8aa   : > { %v5881_v8 = vpop.f32.mrb[47].mxu0  ;;  %v5903_v10 = vpop.f32.mrb[47].mxu1 }
 0x8ab   : > { %v4950_v11 = vadd.f32 %v5879_v9, %v4910_v4 }
 0x8ad   : > { %v4990_v12 = vadd.f32 %v5901_v33, %v4950_v11 }
 0x8c7   : > { %v5921_v14 = vpop.f32.mrb[48].mxu0 }
 0x8c8   : > { %v5943_v15 = vpop.f32.mrb[48].mxu1  ;;  %v5922_v2 = vpop.f32.mrb[49].mxu0 }
 0x8c9   : > { %v5923_v16 = vadd.f32 %v5922_v2, %v5921_v14  ;;  %v5944_v17 = vpop.f32.mrb[49].mxu1  ;;  %v5924_v18 = vpop.f32.mrb[50].mxu0 }
 0x8ca   : > { %v5945_v3 = vadd.f32 %v5944_v17, %v5943_v15  ;;  %v5946_v19 = vpop.f32.mrb[50].mxu1  ;;  %v5925_v20 = vpop.f32.mrb[51].mxu0 }
 0x8cb   : > { %v5030_v13 = vadd.f32 %v5923_v16, %v4990_v12  ;;  %v5947_v22 = vpop.f32.mrb[51].mxu1 }
 0x8cd   : > { %v5070_v23 = vadd.f32 %v5945_v3, %v5030_v13 }
 0x8e7   : > { %v5965_v25 = vpop.f32.mrb[52].mxu0 }
 0x8e8   : > { %v5987_v26 = vpop.f32.mrb[52].mxu1  ;;  %v5966_v27 = vpop.f32.mrb[53].mxu0 }
 0x8e9   : > { %v5967_v28 = vadd.f32 %v5966_v27, %v5965_v25  ;;  %v5988_v29 = vpop.f32.mrb[53].mxu1  ;;  %v5968_v30 = vpop.f32.mrb[54].mxu0 }
 0x8ea   : > { %v5989_v31 = vadd.f32 %v5988_v29, %v5987_v26  ;;  %v5990_v32 = vpop.f32.mrb[54].mxu1  ;;  %v5969_v21 = vpop.f32.mrb[55].mxu0 }
 0x8eb   : > { %v5110_v45 = vadd.f32 %v5967_v28, %v5070_v23  ;;  %v5991_v46 = vpop.f32.mrb[55].mxu1 }
 0x8ed   : > { %v5150_v47 = vadd.f32 %v5989_v31, %v5110_v45 }
 0x8ef   : > { %v5155_v40 = vadd.f32 %v5150_v47, %v7175_v38  ;;  %v5668_v38 = vld [vmem:[%s919_s0] ss:$0 sm:$0xff] }
 0x8f1   : > { %v5158_v48 = vsel %vm1016_vm2, %v5155_v40, 0.0 }
 0x8f2   : > { %5159 = vadd.xlane.f32.xlu0 %v5158_v48 }
 0x97f   : > { %v5160_v49 = vpop.xlane.xlu0 %5159 }
 0x980   : > { %v5161_v50 = vmul.f32 0.015625, %v5160_v49 }
 0x982   : > { %v5162_v53 = vsub.f32 %v5155_v40, %v5161_v50 }
 0x984   : > { %v5163_v54 = vmul.f32 %v5162_v53, %v5162_v53 }
 0x986   : > { %v5164_v55 = vsel %vm1016_vm2, %v5163_v54, 0.0 }
 0x987   : > { %5165 = vadd.xlane.f32.xlu1 %v5164_v55 }
 0xa14   : > { %v5166_v56 = vpop.xlane.xlu1 %5165 }
 0xa15   : > { %v5167_v57 = vmul.f32 0.015625, %v5166_v56 }
 0xa17   : > { %v5168_v58 = vadd.f32 1e-05, %v5167_v57 }
 0xa19   : > { %6605 = vrsqrt.f32 %v5168_v58 }
 0xa23   : > { %v6606_v59 = vpop.eup %6605 }
 0xa24   : > { %v5170_v60 = vmul.f32 %v6606_v59, %v5162_v53  ;;  %5189 = sbr.rel (%p5670_p5) target bundleno = 2750 (0xabe), region = 116 }
 0xa26   : > { %v5177_v34 = vmul.f32 %v5668_v38, %v5170_v60 }
 0xa28   : > { %v5184_v42 = vadd.f32 %v5669_v36, %v5177_v34 }
 0xa2a   : > { %5185 = vst.msk [vmem:[#allocation2] sm:$0xff] %vm1016_vm2, %v5184_v42  ;;  %v5197_v62 = vmul.f32 (!%p5670_p5), %v5671_v61, %v5184_v42 }
 0xa2c   : > { %v5198_v51 = vsel %vm1016_vm2, %v5197_v62, 0.0 }
 0xa2d   : > { %5199 = vadd.xlane.f32.xlu0 %v5198_v51 }
 0xaba   : > { %v5200_v63 = vpop.xlane.xlu0 %5199 }
 0xabb   : > { %v5208_v37 = vadd.f32 %v5672_v24, %v5200_v63 }
 0xabd   : > { %5210 = vst.msk [vmem:[%s7548_s28] sm:$0xff] %vm5209_vm5, %v5208_v37 }
 0xabe PF: > { %s7549_s29 = sld [smem:[#allocation4_spill]] }
 0xac4   : > { %s34_s29 = sadd.s32 1, %s7549_s29  }
 0xac5   : > { %p31_p6 = scmp.ge.s32.totalorder %s34_s29, 4  }
 0xac7   :  { %33 = sbr.rel (!%p31_p6) target bundleno = 15 (0xf), region = 187 }

</bundles_post_ra>
